<compile_context>
chip_gen: v7x
topology: tpu7x:2x2x1
jax: 0.10.0
libtpu: 0.0.40
codegen_flags: <defaults>
</compile_context>

<pallas_src>
import functools

import jax
import jax.numpy as jnp
from jax.experimental import pallas as pl
from jax.experimental.pallas import tpu as pltpu

# ------------------------- small config (scaled-down ViT) -------------------
IN_CHANNELS = 4
PATCH = 4
IMG = 16
EMB = 32
NUM_CLASSES = 10
NUM_LAYERS = 6          # module hardcodes num_layers=6
HEADS = 8               # module hardcodes nhead=8
HEAD_DIM = EMB // HEADS
FF = 64                 # PyTorch default dim_feedforward=2048; scaled down
NUM_PATCHES = (IMG // PATCH) ** 2
SEQ = NUM_PATCHES + 1   # 17 real tokens
SEQ_PAD = 24            # padded to a multiple of 8 sublanes
CPP = IN_CHANNELS * PATCH * PATCH
LN_EPS = 1e-5
NEG_INF = -1e9

# MXU operand dtype (review: bf16 on v6e/v7x; elementwise math stays f32).
MXU_DTYPE = jnp.bfloat16

# Order in which packed params are passed to the kernel (after `patches`).
PARAM_ORDER = (
    "patch_w", "embed_bias", "head_mask", "key_mask",
    "wqkv", "bqkv", "wo", "bo",
    "ln1w", "ln1b", "ln2w", "ln2b",
    "w1", "b1", "w2", "b2",
    "fc_w", "fc_b",
)


# ------------------------------- kernel --------------------------------------
def _layer_norm(x, w, b):
    # two-pass variance (matches PyTorch LayerNorm numerics more closely)
    mu = jnp.mean(x, axis=-1, keepdims=True)
    d = x - mu
    var = jnp.mean(d * d, axis=-1, keepdims=True)
    return d * jax.lax.rsqrt(var + LN_EPS) * w + b


def _vit_kernel(
    patches_ref,                       # (B_TILE, SEQ_PAD, CPP)  row 0 / pad rows are zeros
    pw_ref,                            # (CPP, EMB)        bf16
    ebias_ref,                         # (SEQ_PAD, EMB)    pos (+cls row0, +conv_b rows 1..16), 0 pad
    hmask_ref,                         # (HEADS*SEQ_PAD, EMB) block-diagonal head mask, f32
    kmask_ref,                         # (1, SEQ_PAD)      0 for real keys, -1e9 for pad keys
    wqkv_ref, bqkv_ref, wo_ref, bo_ref,
    ln1w_ref, ln1b_ref, ln2w_ref, ln2b_ref,
    w1_ref, b1_ref, w2_ref, b2_ref,
    fcw_ref, fcb_ref,
    o_ref,                             # (B_TILE, 1, NUM_CLASSES)
    *, b_tile,
):
    f32 = jnp.float32
    rows = b_tile * SEQ_PAD

    # ---- patch embedding + cls token + positional embedding (fused) --------
    if b_tile == 1:
        p = patches_ref[0]                                   # (SEQ_PAD, CPP)
    else:
        p = patches_ref[...].reshape(rows, CPP)              # row-stacked images

    eb = ebias_ref[...]
    if b_tile > 1:
        eb = jnp.concatenate([eb] * b_tile, axis=0)          # (rows, EMB)

    hmask = hmask_ref[...]                                   # (H*S_pad, EMB)
    kmask = kmask_ref[...]                                   # (1, S_pad)

    x = jnp.dot(p, pw_ref[...], preferred_element_type=f32) + eb   # (rows, EMB) f32

    # ---- transformer encoder stack (fori_loop over stacked layer axis) -----
    def layer(l, x):
        qkv = jnp.dot(x.astype(MXU_DTYPE), wqkv_ref[l],
                      preferred_element_type=f32) + bqkv_ref[l]     # (rows, 3E)
        q = qkv[:, :EMB]              # scale 1/sqrt(head_dim) already folded in
        k = qkv[:, EMB:2 * EMB]
        v = qkv[:, 2 * EMB:]

        # attention per image (keys/queries must not mix across images);
        # inside one image all heads are handled at once via the tiled-query
        # + block-diagonal-mask formulation (no per-head reshape/transpose).
        attn_blocks = []
        for b in range(b_tile):
            lo = b * SEQ_PAD
            qb = q[lo:lo + SEQ_PAD, :]                               # (S_pad, E)
            kb = k[lo:lo + SEQ_PAD, :].astype(MXU_DTYPE)
            vb = v[lo:lo + SEQ_PAD, :].astype(MXU_DTYPE)

            # replicate queries along sublanes (no rep_mat matmul), mask heads
            qr = (jnp.concatenate([qb] * HEADS, axis=0) * hmask).astype(MXU_DTYPE)

            s = jax.lax.dot_general(
                qr, kb, (((1,), (1,)), ((), ())),
                preferred_element_type=f32) + kmask                  # (H*S_pad, S_pad)
            s = s - jnp.max(s, axis=-1, keepdims=True)
            e = jnp.exp(s)
            probs = e * pl.reciprocal(jnp.sum(e, axis=-1, keepdims=True),
                                      approx=True)
            ctx = jnp.dot(probs.astype(MXU_DTYPE), vb,
                          preferred_element_type=f32) * hmask        # (H*S_pad, E)

            # head merge = sum of 8 sublane-aligned slabs (no comb_mat matmul)
            merged = ctx[0:SEQ_PAD, :]
            for h in range(1, HEADS):
                merged = merged + ctx[h * SEQ_PAD:(h + 1) * SEQ_PAD, :]
            attn_blocks.append(merged)

        attn = attn_blocks[0] if b_tile == 1 else jnp.concatenate(attn_blocks, 0)
        attn = jnp.dot(attn.astype(MXU_DTYPE), wo_ref[l],
                       preferred_element_type=f32) + bo_ref[l]

        # post-norm encoder layer (norm_first=False), ReLU MLP, dropout=identity
        x1 = _layer_norm(x + attn, ln1w_ref[l], ln1b_ref[l])
        h1 = jnp.maximum(jnp.dot(x1.astype(MXU_DTYPE), w1_ref[l],
                                 preferred_element_type=f32) + b1_ref[l], 0.0)
        h2 = jnp.dot(h1.astype(MXU_DTYPE), w2_ref[l],
                     preferred_element_type=f32) + b2_ref[l]
        return _layer_norm(x1 + h2, ln2w_ref[l], ln2b_ref[l])

    x = jax.lax.fori_loop(0, NUM_LAYERS, layer, x)

    # ---- classification head on each image's cls token ----------------------
    if b_tile == 1:
        cls = x[0:1, :]
    else:
        cls = jnp.concatenate(
            [x[b * SEQ_PAD:b * SEQ_PAD + 1, :] for b in range(b_tile)], axis=0)
    logits = jnp.dot(cls.astype(MXU_DTYPE), fcw_ref[...],
                     preferred_element_type=f32) + fcb_ref[...]      # (b_tile, NC)
    o_ref[...] = logits.reshape(b_tile, 1, NUM_CLASSES)


# ------------------------------ glue / wrapper --------------------------------
def patchify(x):
    """NCHW image -> (B, num_patches, C*P*P), matching
    Conv2d(k=stride=P) + Flatten(2) + transpose(-1,-2)."""
    B, C, H, W = x.shape
    hp, wp = H // PATCH, W // PATCH
    x = x.reshape(B, C, hp, PATCH, wp, PATCH)
    x = x.transpose(0, 2, 4, 1, 3, 5)            # (B, hp, wp, C, P, P)
    return x.reshape(B, hp * wp, CPP)


def _choose_b_tile(batch):
    """Images per grid step: keep b_tile*SEQ_PAD near one 128-row MXU pass,
    and keep the grid length even so both v7x TensorCores get work."""
    max_tile = max(1, 128 // SEQ_PAD)
    best_any, best_even = 1, 0
    for t in range(1, min(batch, max_tile) + 1):
        if batch % t == 0:
            best_any = t
            if (batch // t) % 2 == 0:
                best_even = t
    return best_even or best_any


def vit_forward(x, pp):
    B = x.shape[0]
    b_tile = _choose_b_tile(B)
    grid_len = B // b_tile

    patches = patchify(x).astype(MXU_DTYPE)                            # (B, Np, CPP)
    # row 0 = cls slot (zeros), rows 17..23 = sublane padding (zeros)
    patches = jnp.pad(patches,
                      ((0, 0), (1, SEQ_PAD - 1 - NUM_PATCHES), (0, 0)))  # (B, SEQ_PAD, CPP)

    weights = [pp[k] for k in PARAM_ORDER]

    def full_spec(a):
        nd = a.ndim
        return pl.BlockSpec(a.shape, lambda g, _nd=nd: (0,) * _nd)

    out = pl.pallas_call(
        functools.partial(_vit_kernel, b_tile=b_tile),
        out_shape=jax.ShapeDtypeStruct((B, 1, NUM_CLASSES), jnp.float32),
        grid=(grid_len,),
        in_specs=[pl.BlockSpec((b_tile, SEQ_PAD, CPP), lambda g: (g, 0, 0))]
                 + [full_spec(a) for a in weights],
        out_specs=pl.BlockSpec((b_tile, 1, NUM_CLASSES), lambda g: (g, 0, 0)),
        compiler_params=pltpu.CompilerParams(
            dimension_semantics=("parallel",)),   # v7x: grid steps split over TCs
    )(patches, *weights)
    return out[:, 0, :]


def pack_params(p):
    """One-time (init-time) repack: pre-transpose weights, stack layers on a
    leading axis, fold cls/conv-bias into the positional table, fold the
    1/sqrt(head_dim) scale into Wq/bq, precompute head/key masks, cast MXU
    operands to bf16."""
    layers = p["layers"]
    stk = lambda f: jnp.stack([f(lp) for lp in layers])

    # embedding bias (pos + conv bias, cls folded into row 0, zero pad rows)
    pos = p["pos_emb"].reshape(SEQ, EMB)
    eb = pos + p["conv_b"][None, :]
    eb = eb.at[0].set(pos[0] + p["cls_token"].reshape(EMB))
    embed_bias = jnp.zeros((SEQ_PAD, EMB), jnp.float32).at[:SEQ].set(eb)

    # block-diagonal head mask over (head-replica rows) x (head-dim columns)
    r = jnp.arange(HEADS * SEQ_PAD)
    e = jnp.arange(EMB)
    head_mask = (e[None, :] // HEAD_DIM == r[:, None] // SEQ_PAD).astype(jnp.float32)

    # additive mask for padded key columns
    key_mask = jnp.where(jnp.arange(SEQ_PAD) < SEQ, 0.0, NEG_INF)
    key_mask = key_mask.astype(jnp.float32).reshape(1, SEQ_PAD)

    # fold 1/sqrt(head_dim) into the Q third of the qkv projection
    scale = 1.0 / (HEAD_DIM ** 0.5)
    qscale = jnp.concatenate(
        [jnp.full((EMB,), scale), jnp.ones((2 * EMB,))]).astype(jnp.float32)

    return {
        "patch_w": p["conv_w"].reshape(EMB, -1).T.astype(MXU_DTYPE),    # (CPP, E)
        "embed_bias": embed_bias,                                       # (SEQ_PAD, E)
        "head_mask": head_mask,                                         # (H*S_pad, E)
        "key_mask": key_mask,                                           # (1, S_pad)
        "wqkv": stk(lambda lp: (lp["wqkv"].T * qscale[None, :]).astype(MXU_DTYPE)),
        "bqkv": stk(lambda lp: (lp["bqkv"] * qscale).reshape(1, -1)),   # f32
        "wo":   stk(lambda lp: lp["wo"].T.astype(MXU_DTYPE)),           # (L, E, E)
        "bo":   stk(lambda lp: lp["bo"].reshape(1, -1)),
        "ln1w": stk(lambda lp: lp["ln1w"].reshape(1, -1)),
        "ln1b": stk(lambda lp: lp["ln1b"].reshape(1, -1)),
        "ln2w": stk(lambda lp: lp["ln2w"].reshape(1, -1)),
        "ln2b": stk(lambda lp: lp["ln2b"].reshape(1, -1)),
        "w1":   stk(lambda lp: lp["w1"].T.astype(MXU_DTYPE)),           # (L, E, F)
        "b1":   stk(lambda lp: lp["b1"].reshape(1, -1)),
        "w2":   stk(lambda lp: lp["w2"].T.astype(MXU_DTYPE)),           # (L, F, E)
        "b2":   stk(lambda lp: lp["b2"].reshape(1, -1)),
        "fc_w": p["fc_w"].T.astype(MXU_DTYPE),                          # (E, NC)
        "fc_b": p["fc_b"].reshape(1, -1),                               # (1, NC)
    }


def init_params(key):
    """PyTorch-layout parameter init (same shapes as the nn.Module)."""
    scale = 0.02
    keys = jax.random.split(key, 8 + NUM_LAYERS)
    n = lambda k, shp: scale * jax.random.normal(k, shp, jnp.float32)

    params = {
        "conv_w": n(keys[0], (EMB, IN_CHANNELS, PATCH, PATCH)),
        "conv_b": n(keys[1], (EMB,)),
        "cls_token": n(keys[2], (1, 1, EMB)),
        "pos_emb": n(keys[3], (1, SEQ, EMB)),
        "fc_w": n(keys[4], (NUM_CLASSES, EMB)),
        "fc_b": n(keys[5], (NUM_CLASSES,)),
        "layers": [],
    }
    for l in range(NUM_LAYERS):
        lk = jax.random.split(keys[8 + l], 8)
        params["layers"].append({
            "wqkv": n(lk[0], (3 * EMB, EMB)),   # in_proj_weight
            "bqkv": n(lk[1], (3 * EMB,)),
            "wo": n(lk[2], (EMB, EMB)),         # out_proj
            "bo": n(lk[3], (EMB,)),
            "w1": n(lk[4], (FF, EMB)),          # linear1
            "b1": n(lk[5], (FF,)),
            "w2": n(lk[6], (EMB, FF)),          # linear2
            "b2": n(lk[7], (EMB,)),
            "ln1w": jnp.ones((EMB,), jnp.float32),
            "ln1b": jnp.zeros((EMB,), jnp.float32),
            "ln2w": jnp.ones((EMB,), jnp.float32),
            "ln2b": jnp.zeros((EMB,), jnp.float32),
        })
    return params


if __name__ == "__main__":
    key = jax.random.PRNGKey(0)
    pkey, xkey = jax.random.split(key)
    params = pack_params(init_params(pkey))      # one-time device-ready layout

    x = jax.random.normal(xkey, (2, IN_CHANNELS, IMG, IMG), jnp.float32)

    logits = jax.jit(vit_forward)(x, params)
    logits = jax.block_until_ready(logits)

    assert logits.shape == (2, NUM_CLASSES), logits.shape
    assert bool(jnp.all(jnp.isfinite(logits)))
    print("KERNEL_OK")
</pallas_src>

<mosaic_0001>
module attributes {stable_mosaic.version = 11 : i64} {
  func.func @_vit_kernel(%arg0: i32, %arg1: memref<1x24x64xbf16, #tpu.memory_space<vmem>>, %arg2: memref<64x32xbf16, #tpu.memory_space<vmem>>, %arg3: memref<24x32xf32, #tpu.memory_space<vmem>>, %arg4: memref<192x32xf32, #tpu.memory_space<vmem>>, %arg5: memref<1x24xf32, #tpu.memory_space<vmem>>, %arg6: memref<6x32x96xbf16, #tpu.memory_space<vmem>>, %arg7: memref<6x1x96xf32, #tpu.memory_space<vmem>>, %arg8: memref<6x32x32xbf16, #tpu.memory_space<vmem>>, %arg9: memref<6x1x32xf32, #tpu.memory_space<vmem>>, %arg10: memref<6x1x32xf32, #tpu.memory_space<vmem>>, %arg11: memref<6x1x32xf32, #tpu.memory_space<vmem>>, %arg12: memref<6x1x32xf32, #tpu.memory_space<vmem>>, %arg13: memref<6x1x32xf32, #tpu.memory_space<vmem>>, %arg14: memref<6x32x64xbf16, #tpu.memory_space<vmem>>, %arg15: memref<6x1x64xf32, #tpu.memory_space<vmem>>, %arg16: memref<6x64x32xbf16, #tpu.memory_space<vmem>>, %arg17: memref<6x1x32xf32, #tpu.memory_space<vmem>>, %arg18: memref<32x10xbf16, #tpu.memory_space<vmem>>, %arg19: memref<1x10xf32, #tpu.memory_space<vmem>>, %arg20: memref<1x1x10xf32, #tpu.memory_space<vmem>>) attributes {dimension_semantics = [#tpu.dimension_semantics<parallel>], iteration_bounds = array<i64: 2>, scalar_prefetch = 0 : i64, scratch_operands = 0 : i64, tpu.core_type = #tpu.core_type<tc>, window_params = [{transform_indices = @transform_0, window_bounds = array<i64: 1, 24, 64>}, {pipeline_mode = #tpu.pipeline_mode<synchronous>, transform_indices = @transform_1, window_bounds = array<i64: 64, 32>}, {pipeline_mode = #tpu.pipeline_mode<synchronous>, transform_indices = @transform_2, window_bounds = array<i64: 24, 32>}, {pipeline_mode = #tpu.pipeline_mode<synchronous>, transform_indices = @transform_3, window_bounds = array<i64: 192, 32>}, {pipeline_mode = #tpu.pipeline_mode<synchronous>, transform_indices = @transform_4, window_bounds = array<i64: 1, 24>}, {pipeline_mode = #tpu.pipeline_mode<synchronous>, transform_indices = @transform_5, window_bounds = array<i64: 6, 32, 96>}, {pipeline_mode = #tpu.pipeline_mode<synchronous>, transform_indices = @transform_6, window_bounds = array<i64: 6, 1, 96>}, {pipeline_mode = #tpu.pipeline_mode<synchronous>, transform_indices = @transform_7, window_bounds = array<i64: 6, 32, 32>}, {pipeline_mode = #tpu.pipeline_mode<synchronous>, transform_indices = @transform_8, window_bounds = array<i64: 6, 1, 32>}, {pipeline_mode = #tpu.pipeline_mode<synchronous>, transform_indices = @transform_9, window_bounds = array<i64: 6, 1, 32>}, {pipeline_mode = #tpu.pipeline_mode<synchronous>, transform_indices = @transform_10, window_bounds = array<i64: 6, 1, 32>}, {pipeline_mode = #tpu.pipeline_mode<synchronous>, transform_indices = @transform_11, window_bounds = array<i64: 6, 1, 32>}, {pipeline_mode = #tpu.pipeline_mode<synchronous>, transform_indices = @transform_12, window_bounds = array<i64: 6, 1, 32>}, {pipeline_mode = #tpu.pipeline_mode<synchronous>, transform_indices = @transform_13, window_bounds = array<i64: 6, 32, 64>}, {pipeline_mode = #tpu.pipeline_mode<synchronous>, transform_indices = @transform_14, window_bounds = array<i64: 6, 1, 64>}, {pipeline_mode = #tpu.pipeline_mode<synchronous>, transform_indices = @transform_15, window_bounds = array<i64: 6, 64, 32>}, {pipeline_mode = #tpu.pipeline_mode<synchronous>, transform_indices = @transform_16, window_bounds = array<i64: 6, 1, 32>}, {pipeline_mode = #tpu.pipeline_mode<synchronous>, transform_indices = @transform_17, window_bounds = array<i64: 32, 10>}, {pipeline_mode = #tpu.pipeline_mode<synchronous>, transform_indices = @transform_18, window_bounds = array<i64: 1, 10>}, {transform_indices = @transform_19, window_bounds = array<i64: 1, 1, 10>}]} {
    %c0 = arith.constant 0 : index
    %c0_0 = arith.constant 0 : index
    %c0_1 = arith.constant 0 : index
    %0 = vector.load %arg1[%c0, %c0_0, %c0_1] : memref<1x24x64xbf16, #tpu.memory_space<vmem>>, vector<1x24x64xbf16>
    %1 = vector.shape_cast %0 : vector<1x24x64xbf16> to vector<24x64xbf16>
    %c0_2 = arith.constant 0 : index
    %c0_3 = arith.constant 0 : index
    %2 = vector.load %arg3[%c0_2, %c0_3] : memref<24x32xf32, #tpu.memory_space<vmem>>, vector<24x32xf32>
    %c0_4 = arith.constant 0 : index
    %c0_5 = arith.constant 0 : index
    %3 = vector.load %arg4[%c0_4, %c0_5] : memref<192x32xf32, #tpu.memory_space<vmem>>, vector<192x32xf32>
    %c0_6 = arith.constant 0 : index
    %c0_7 = arith.constant 0 : index
    %4 = vector.load %arg5[%c0_6, %c0_7] : memref<1x24xf32, #tpu.memory_space<vmem>>, vector<1x24xf32>
    %c0_8 = arith.constant 0 : index
    %c0_9 = arith.constant 0 : index
    %5 = vector.load %arg2[%c0_8, %c0_9] : memref<64x32xbf16, #tpu.memory_space<vmem>>, vector<64x32xbf16>
    %cst = arith.constant dense<0.000000e+00> : vector<24x32xf32>
    %6 = tpu.matmul %1, %5, %cst {dimension_numbers = #tpu.dot_dimension_numbers<[1], [0], [0], [1], [0, 0, 1, 1], [], []>} : vector<24x64xbf16>, vector<64x32xbf16>, vector<24x32xf32> -> vector<24x32xf32>
    %7 = arith.addf %6, %2 : vector<24x32xf32>
    %c0_i32 = arith.constant 0 : i32
    %c6_i32 = arith.constant 6 : i32
    %8 = arith.addi %c0_i32, %c6_i32 : i32
    %c1_i32 = arith.constant 1 : i32
    %9 = scf.for %arg21 = %c0_i32 to %8 step %c1_i32 iter_args(%arg22 = %7) -> (vector<24x32xf32>)  : i32 {
      %18 = arith.truncf %arg22 : vector<24x32xf32> to vector<24x32xbf16>
      %19 = arith.index_cast %arg21 : i32 to index
      %c0_19 = arith.constant 0 : index
      %c0_20 = arith.constant 0 : index
      %20 = vector.load %arg6[%19, %c0_19, %c0_20] : memref<6x32x96xbf16, #tpu.memory_space<vmem>>, vector<1x32x96xbf16>
      %21 = vector.shape_cast %20 : vector<1x32x96xbf16> to vector<32x96xbf16>
      %cst_21 = arith.constant dense<0.000000e+00> : vector<24x96xf32>
      %22 = tpu.matmul %18, %21, %cst_21 {dimension_numbers = #tpu.dot_dimension_numbers<[1], [0], [0], [1], [0, 0, 1, 1], [], []>} : vector<24x32xbf16>, vector<32x96xbf16>, vector<24x96xf32> -> vector<24x96xf32>
      %23 = arith.index_cast %arg21 : i32 to index
      %c0_22 = arith.constant 0 : index
      %c0_23 = arith.constant 0 : index
      %24 = vector.load %arg7[%23, %c0_22, %c0_23] : memref<6x1x96xf32, #tpu.memory_space<vmem>>, vector<1x1x96xf32>
      %25 = vector.shape_cast %24 : vector<1x1x96xf32> to vector<1x96xf32>
      %26 = vector.broadcast %25 : vector<1x96xf32> to vector<24x96xf32>
      %27 = arith.addf %22, %26 : vector<24x96xf32>
      %28 = vector.extract_strided_slice %27 {offsets = [0, 0], sizes = [24, 32], strides = [1, 1]} : vector<24x96xf32> to vector<24x32xf32>
      %29 = vector.extract_strided_slice %27 {offsets = [0, 32], sizes = [24, 32], strides = [1, 1]} : vector<24x96xf32> to vector<24x32xf32>
      %30 = vector.extract_strided_slice %27 {offsets = [0, 64], sizes = [24, 32], strides = [1, 1]} : vector<24x96xf32> to vector<24x32xf32>
      %31 = arith.truncf %29 : vector<24x32xf32> to vector<24x32xbf16>
      %32 = arith.truncf %30 : vector<24x32xf32> to vector<24x32xbf16>
      %33 = tpu.concatenate %28, %28, %28, %28, %28, %28, %28, %28 in 0 : vector<24x32xf32>, vector<24x32xf32>, vector<24x32xf32>, vector<24x32xf32>, vector<24x32xf32>, vector<24x32xf32>, vector<24x32xf32>, vector<24x32xf32> -> vector<192x32xf32>
      %34 = arith.mulf %33, %3 : vector<192x32xf32>
      %35 = arith.truncf %34 : vector<192x32xf32> to vector<192x32xbf16>
      %cst_24 = arith.constant dense<0.000000e+00> : vector<192x24xf32>
      %36 = tpu.matmul %35, %31, %cst_24 {dimension_numbers = #tpu.dot_dimension_numbers<[1], [1], [0], [0], [0, 0, 1, 0], [], []>} : vector<192x32xbf16>, vector<24x32xbf16>, vector<192x24xf32> -> vector<192x24xf32>
      %37 = vector.broadcast %4 : vector<1x24xf32> to vector<192x24xf32>
      %38 = arith.addf %36, %37 : vector<192x24xf32>
      %cst_25 = arith.constant dense<0xFF800000> : vector<192xf32>
      %39 = vector.multi_reduction <maximumf>, %38, %cst_25 [1] : vector<192x24xf32> to vector<192xf32>
      %40 = vector.shape_cast %39 : vector<192xf32> to vector<192x1xf32>
      %41 = vector.broadcast %40 : vector<192x1xf32> to vector<192x24xf32>
      %42 = arith.subf %38, %41 : vector<192x24xf32>
      %43 = math.exp %42 : vector<192x24xf32>
      %cst_26 = arith.constant dense<0.000000e+00> : vector<192xf32>
      %44 = vector.multi_reduction <add>, %43, %cst_26 [1] : vector<192x24xf32> to vector<192xf32>
      %45 = vector.shape_cast %44 : vector<192xf32> to vector<192x1xf32>
      %46 = tpu.reciprocal %45 {approx = true} : vector<192x1xf32> -> vector<192x1xf32>
      %47 = vector.broadcast %46 : vector<192x1xf32> to vector<192x24xf32>
      %48 = arith.mulf %43, %47 : vector<192x24xf32>
      %49 = arith.truncf %48 : vector<192x24xf32> to vector<192x24xbf16>
      %cst_27 = arith.constant dense<0.000000e+00> : vector<192x32xf32>
      %50 = tpu.matmul %49, %32, %cst_27 {dimension_numbers = #tpu.dot_dimension_numbers<[1], [0], [0], [1], [0, 0, 1, 1], [], []>} : vector<192x24xbf16>, vector<24x32xbf16>, vector<192x32xf32> -> vector<192x32xf32>
      %51 = arith.mulf %50, %3 : vector<192x32xf32>
      %52 = vector.extract_strided_slice %51 {offsets = [0, 0], sizes = [24, 32], strides = [1, 1]} : vector<192x32xf32> to vector<24x32xf32>
      %53 = vector.extract_strided_slice %51 {offsets = [24, 0], sizes = [24, 32], strides = [1, 1]} : vector<192x32xf32> to vector<24x32xf32>
      %54 = arith.addf %52, %53 : vector<24x32xf32>
      %55 = vector.extract_strided_slice %51 {offsets = [48, 0], sizes = [24, 32], strides = [1, 1]} : vector<192x32xf32> to vector<24x32xf32>
      %56 = arith.addf %54, %55 : vector<24x32xf32>
      %57 = vector.extract_strided_slice %51 {offsets = [72, 0], sizes = [24, 32], strides = [1, 1]} : vector<192x32xf32> to vector<24x32xf32>
      %58 = arith.addf %56, %57 : vector<24x32xf32>
      %59 = vector.extract_strided_slice %51 {offsets = [96, 0], sizes = [24, 32], strides = [1, 1]} : vector<192x32xf32> to vector<24x32xf32>
      %60 = arith.addf %58, %59 : vector<24x32xf32>
      %61 = vector.extract_strided_slice %51 {offsets = [120, 0], sizes = [24, 32], strides = [1, 1]} : vector<192x32xf32> to vector<24x32xf32>
      %62 = arith.addf %60, %61 : vector<24x32xf32>
      %63 = vector.extract_strided_slice %51 {offsets = [144, 0], sizes = [24, 32], strides = [1, 1]} : vector<192x32xf32> to vector<24x32xf32>
      %64 = arith.addf %62, %63 : vector<24x32xf32>
      %65 = vector.extract_strided_slice %51 {offsets = [168, 0], sizes = [24, 32], strides = [1, 1]} : vector<192x32xf32> to vector<24x32xf32>
      %66 = arith.addf %64, %65 : vector<24x32xf32>
      %67 = arith.truncf %66 : vector<24x32xf32> to vector<24x32xbf16>
      %68 = arith.index_cast %arg21 : i32 to index
      %c0_28 = arith.constant 0 : index
      %c0_29 = arith.constant 0 : index
      %69 = vector.load %arg8[%68, %c0_28, %c0_29] : memref<6x32x32xbf16, #tpu.memory_space<vmem>>, vector<1x32x32xbf16>
      %70 = vector.shape_cast %69 : vector<1x32x32xbf16> to vector<32x32xbf16>
      %cst_30 = arith.constant dense<0.000000e+00> : vector<24x32xf32>
      %71 = tpu.matmul %67, %70, %cst_30 {dimension_numbers = #tpu.dot_dimension_numbers<[1], [0], [0], [1], [0, 0, 1, 1], [], []>} : vector<24x32xbf16>, vector<32x32xbf16>, vector<24x32xf32> -> vector<24x32xf32>
      %72 = arith.index_cast %arg21 : i32 to index
      %c0_31 = arith.constant 0 : index
      %c0_32 = arith.constant 0 : index
      %73 = vector.load %arg9[%72, %c0_31, %c0_32] : memref<6x1x32xf32, #tpu.memory_space<vmem>>, vector<1x1x32xf32>
      %74 = vector.shape_cast %73 : vector<1x1x32xf32> to vector<1x32xf32>
      %75 = vector.broadcast %74 : vector<1x32xf32> to vector<24x32xf32>
      %76 = arith.addf %71, %75 : vector<24x32xf32>
      %77 = arith.addf %arg22, %76 : vector<24x32xf32>
      %78 = arith.index_cast %arg21 : i32 to index
      %c0_33 = arith.constant 0 : index
      %c0_34 = arith.constant 0 : index
      %79 = vector.load %arg10[%78, %c0_33, %c0_34] : memref<6x1x32xf32, #tpu.memory_space<vmem>>, vector<1x1x32xf32>
      %80 = vector.shape_cast %79 : vector<1x1x32xf32> to vector<1x32xf32>
      %81 = arith.index_cast %arg21 : i32 to index
      %c0_35 = arith.constant 0 : index
      %c0_36 = arith.constant 0 : index
      %82 = vector.load %arg11[%81, %c0_35, %c0_36] : memref<6x1x32xf32, #tpu.memory_space<vmem>>, vector<1x1x32xf32>
      %83 = vector.shape_cast %82 : vector<1x1x32xf32> to vector<1x32xf32>
      %cst_37 = arith.constant dense<0.000000e+00> : vector<24xf32>
      %84 = vector.multi_reduction <add>, %77, %cst_37 [1] : vector<24x32xf32> to vector<24xf32>
      %85 = vector.shape_cast %84 : vector<24xf32> to vector<24x1xf32>
      %cst_38 = arith.constant 3.200000e+01 : f32
      %86 = vector.broadcast %cst_38 : f32 to vector<24x1xf32>
      %87 = arith.divf %85, %86 : vector<24x1xf32>
      %88 = vector.broadcast %87 : vector<24x1xf32> to vector<24x32xf32>
      %89 = arith.subf %77, %88 : vector<24x32xf32>
      %90 = arith.mulf %89, %89 : vector<24x32xf32>
      %cst_39 = arith.constant dense<0.000000e+00> : vector<24xf32>
      %91 = vector.multi_reduction <add>, %90, %cst_39 [1] : vector<24x32xf32> to vector<24xf32>
      %92 = vector.shape_cast %91 : vector<24xf32> to vector<24x1xf32>
      %cst_40 = arith.constant 3.200000e+01 : f32
      %93 = vector.broadcast %cst_40 : f32 to vector<24x1xf32>
      %94 = arith.divf %92, %93 : vector<24x1xf32>
      %cst_41 = arith.constant 9.99999974E-6 : f32
      %95 = vector.broadcast %cst_41 : f32 to vector<24x1xf32>
      %96 = arith.addf %94, %95 : vector<24x1xf32>
      %97 = math.rsqrt %96 : vector<24x1xf32>
      %98 = vector.broadcast %97 : vector<24x1xf32> to vector<24x32xf32>
      %99 = arith.mulf %89, %98 : vector<24x32xf32>
      %100 = vector.broadcast %80 : vector<1x32xf32> to vector<24x32xf32>
      %101 = arith.mulf %99, %100 : vector<24x32xf32>
      %102 = vector.broadcast %83 : vector<1x32xf32> to vector<24x32xf32>
      %103 = arith.addf %101, %102 : vector<24x32xf32>
      %104 = arith.truncf %103 : vector<24x32xf32> to vector<24x32xbf16>
      %105 = arith.index_cast %arg21 : i32 to index
      %c0_42 = arith.constant 0 : index
      %c0_43 = arith.constant 0 : index
      %106 = vector.load %arg14[%105, %c0_42, %c0_43] : memref<6x32x64xbf16, #tpu.memory_space<vmem>>, vector<1x32x64xbf16>
      %107 = vector.shape_cast %106 : vector<1x32x64xbf16> to vector<32x64xbf16>
      %cst_44 = arith.constant dense<0.000000e+00> : vector<24x64xf32>
      %108 = tpu.matmul %104, %107, %cst_44 {dimension_numbers = #tpu.dot_dimension_numbers<[1], [0], [0], [1], [0, 0, 1, 1], [], []>} : vector<24x32xbf16>, vector<32x64xbf16>, vector<24x64xf32> -> vector<24x64xf32>
      %109 = arith.index_cast %arg21 : i32 to index
      %c0_45 = arith.constant 0 : index
      %c0_46 = arith.constant 0 : index
      %110 = vector.load %arg15[%109, %c0_45, %c0_46] : memref<6x1x64xf32, #tpu.memory_space<vmem>>, vector<1x1x64xf32>
      %111 = vector.shape_cast %110 : vector<1x1x64xf32> to vector<1x64xf32>
      %112 = vector.broadcast %111 : vector<1x64xf32> to vector<24x64xf32>
      %113 = arith.addf %108, %112 : vector<24x64xf32>
      %cst_47 = arith.constant 0.000000e+00 : f32
      %114 = vector.broadcast %cst_47 : f32 to vector<24x64xf32>
      %115 = arith.maximumf %113, %114 : vector<24x64xf32>
      %116 = arith.truncf %115 : vector<24x64xf32> to vector<24x64xbf16>
      %117 = arith.index_cast %arg21 : i32 to index
      %c0_48 = arith.constant 0 : index
      %c0_49 = arith.constant 0 : index
      %118 = vector.load %arg16[%117, %c0_48, %c0_49] : memref<6x64x32xbf16, #tpu.memory_space<vmem>>, vector<1x64x32xbf16>
      %119 = vector.shape_cast %118 : vector<1x64x32xbf16> to vector<64x32xbf16>
      %cst_50 = arith.constant dense<0.000000e+00> : vector<24x32xf32>
      %120 = tpu.matmul %116, %119, %cst_50 {dimension_numbers = #tpu.dot_dimension_numbers<[1], [0], [0], [1], [0, 0, 1, 1], [], []>} : vector<24x64xbf16>, vector<64x32xbf16>, vector<24x32xf32> -> vector<24x32xf32>
      %121 = arith.index_cast %arg21 : i32 to index
      %c0_51 = arith.constant 0 : index
      %c0_52 = arith.constant 0 : index
      %122 = vector.load %arg17[%121, %c0_51, %c0_52] : memref<6x1x32xf32, #tpu.memory_space<vmem>>, vector<1x1x32xf32>
      %123 = vector.shape_cast %122 : vector<1x1x32xf32> to vector<1x32xf32>
      %124 = vector.broadcast %123 : vector<1x32xf32> to vector<24x32xf32>
      %125 = arith.addf %120, %124 : vector<24x32xf32>
      %126 = arith.addf %103, %125 : vector<24x32xf32>
      %127 = arith.index_cast %arg21 : i32 to index
      %c0_53 = arith.constant 0 : index
      %c0_54 = arith.constant 0 : index
      %128 = vector.load %arg12[%127, %c0_53, %c0_54] : memref<6x1x32xf32, #tpu.memory_space<vmem>>, vector<1x1x32xf32>
      %129 = vector.shape_cast %128 : vector<1x1x32xf32> to vector<1x32xf32>
      %130 = arith.index_cast %arg21 : i32 to index
      %c0_55 = arith.constant 0 : index
      %c0_56 = arith.constant 0 : index
      %131 = vector.load %arg13[%130, %c0_55, %c0_56] : memref<6x1x32xf32, #tpu.memory_space<vmem>>, vector<1x1x32xf32>
      %132 = vector.shape_cast %131 : vector<1x1x32xf32> to vector<1x32xf32>
      %cst_57 = arith.constant dense<0.000000e+00> : vector<24xf32>
      %133 = vector.multi_reduction <add>, %126, %cst_57 [1] : vector<24x32xf32> to vector<24xf32>
      %134 = vector.shape_cast %133 : vector<24xf32> to vector<24x1xf32>
      %cst_58 = arith.constant 3.200000e+01 : f32
      %135 = vector.broadcast %cst_58 : f32 to vector<24x1xf32>
      %136 = arith.divf %134, %135 : vector<24x1xf32>
      %137 = vector.broadcast %136 : vector<24x1xf32> to vector<24x32xf32>
      %138 = arith.subf %126, %137 : vector<24x32xf32>
      %139 = arith.mulf %138, %138 : vector<24x32xf32>
      %cst_59 = arith.constant dense<0.000000e+00> : vector<24xf32>
      %140 = vector.multi_reduction <add>, %139, %cst_59 [1] : vector<24x32xf32> to vector<24xf32>
      %141 = vector.shape_cast %140 : vector<24xf32> to vector<24x1xf32>
      %cst_60 = arith.constant 3.200000e+01 : f32
      %142 = vector.broadcast %cst_60 : f32 to vector<24x1xf32>
      %143 = arith.divf %141, %142 : vector<24x1xf32>
      %cst_61 = arith.constant 9.99999974E-6 : f32
      %144 = vector.broadcast %cst_61 : f32 to vector<24x1xf32>
      %145 = arith.addf %143, %144 : vector<24x1xf32>
      %146 = math.rsqrt %145 : vector<24x1xf32>
      %147 = vector.broadcast %146 : vector<24x1xf32> to vector<24x32xf32>
      %148 = arith.mulf %138, %147 : vector<24x32xf32>
      %149 = vector.broadcast %129 : vector<1x32xf32> to vector<24x32xf32>
      %150 = arith.mulf %148, %149 : vector<24x32xf32>
      %151 = vector.broadcast %132 : vector<1x32xf32> to vector<24x32xf32>
      %152 = arith.addf %150, %151 : vector<24x32xf32>
      scf.yield %152 : vector<24x32xf32>
    }
    %c6_i32_10 = arith.constant 6 : i32
    %10 = vector.extract_strided_slice %9 {offsets = [0, 0], sizes = [1, 32], strides = [1, 1]} : vector<24x32xf32> to vector<1x32xf32>
    %11 = arith.truncf %10 : vector<1x32xf32> to vector<1x32xbf16>
    %c0_11 = arith.constant 0 : index
    %c0_12 = arith.constant 0 : index
    %12 = vector.load %arg18[%c0_11, %c0_12] : memref<32x10xbf16, #tpu.memory_space<vmem>>, vector<32x10xbf16>
    %cst_13 = arith.constant dense<0.000000e+00> : vector<1x10xf32>
    %13 = tpu.matmul %11, %12, %cst_13 {dimension_numbers = #tpu.dot_dimension_numbers<[1], [0], [0], [1], [0, 0, 1, 1], [], []>} : vector<1x32xbf16>, vector<32x10xbf16>, vector<1x10xf32> -> vector<1x10xf32>
    %c0_14 = arith.constant 0 : index
    %c0_15 = arith.constant 0 : index
    %14 = vector.load %arg19[%c0_14, %c0_15] : memref<1x10xf32, #tpu.memory_space<vmem>>, vector<1x10xf32>
    %15 = arith.addf %13, %14 : vector<1x10xf32>
    %16 = vector.shape_cast %15 : vector<1x10xf32> to vector<1x1x10xf32>
    %c0_16 = arith.constant 0 : index
    %c0_17 = arith.constant 0 : index
    %c0_18 = arith.constant 0 : index
    %17 = vector.load %arg20[%c0_16, %c0_17, %c0_18] : memref<1x1x10xf32, #tpu.memory_space<vmem>>, vector<1x1x10xf32>
    tpu.vector_store %arg20[%c0_16, %c0_17, %c0_18], %16 {strides = array<i32>} : memref<1x1x10xf32, #tpu.memory_space<vmem>>, vector<1x1x10xf32>,
    return
  }
  func.func @transform_0(%arg0: i32) -> (i32, i32, i32) {
    %c0_i32 = arith.constant 0 : i32
    %c0_i32_0 = arith.constant 0 : i32
    %c0_i32_1 = arith.constant 0 : i32
    return %arg0, %c0_i32, %c0_i32_0 : i32, i32, i32
  }
  func.func @transform_1(%arg0: i32) -> (i32, i32) {
    %c0_i32 = arith.constant 0 : i32
    %c0_i32_0 = arith.constant 0 : i32
    %c0_i32_1 = arith.constant 0 : i32
    return %c0_i32, %c0_i32_0 : i32, i32
  }
  func.func @transform_2(%arg0: i32) -> (i32, i32) {
    %c0_i32 = arith.constant 0 : i32
    %c0_i32_0 = arith.constant 0 : i32
    %c0_i32_1 = arith.constant 0 : i32
    return %c0_i32, %c0_i32_0 : i32, i32
  }
  func.func @transform_3(%arg0: i32) -> (i32, i32) {
    %c0_i32 = arith.constant 0 : i32
    %c0_i32_0 = arith.constant 0 : i32
    %c0_i32_1 = arith.constant 0 : i32
    return %c0_i32, %c0_i32_0 : i32, i32
  }
  func.func @transform_4(%arg0: i32) -> (i32, i32) {
    %c0_i32 = arith.constant 0 : i32
    %c0_i32_0 = arith.constant 0 : i32
    %c0_i32_1 = arith.constant 0 : i32
    return %c0_i32, %c0_i32_0 : i32, i32
  }
  func.func @transform_5(%arg0: i32) -> (i32, i32, i32) {
    %c0_i32 = arith.constant 0 : i32
    %c0_i32_0 = arith.constant 0 : i32
    %c0_i32_1 = arith.constant 0 : i32
    %c0_i32_2 = arith.constant 0 : i32
    return %c0_i32, %c0_i32_0, %c0_i32_1 : i32, i32, i32
  }
  func.func @transform_6(%arg0: i32) -> (i32, i32, i32) {
    %c0_i32 = arith.constant 0 : i32
    %c0_i32_0 = arith.constant 0 : i32
    %c0_i32_1 = arith.constant 0 : i32
    %c0_i32_2 = arith.constant 0 : i32
    return %c0_i32, %c0_i32_0, %c0_i32_1 : i32, i32, i32
  }
  func.func @transform_7(%arg0: i32) -> (i32, i32, i32) {
    %c0_i32 = arith.constant 0 : i32
    %c0_i32_0 = arith.constant 0 : i32
    %c0_i32_1 = arith.constant 0 : i32
    %c0_i32_2 = arith.constant 0 : i32
    return %c0_i32, %c0_i32_0, %c0_i32_1 : i32, i32, i32
  }
  func.func @transform_8(%arg0: i32) -> (i32, i32, i32) {
    %c0_i32 = arith.constant 0 : i32
    %c0_i32_0 = arith.constant 0 : i32
    %c0_i32_1 = arith.constant 0 : i32
    %c0_i32_2 = arith.constant 0 : i32
    return %c0_i32, %c0_i32_0, %c0_i32_1 : i32, i32, i32
  }
  func.func @transform_9(%arg0: i32) -> (i32, i32, i32) {
    %c0_i32 = arith.constant 0 : i32
    %c0_i32_0 = arith.constant 0 : i32
    %c0_i32_1 = arith.constant 0 : i32
    %c0_i32_2 = arith.constant 0 : i32
    return %c0_i32, %c0_i32_0, %c0_i32_1 : i32, i32, i32
  }
  func.func @transform_10(%arg0: i32) -> (i32, i32, i32) {
    %c0_i32 = arith.constant 0 : i32
    %c0_i32_0 = arith.constant 0 : i32
    %c0_i32_1 = arith.constant 0 : i32
    %c0_i32_2 = arith.constant 0 : i32
    return %c0_i32, %c0_i32_0, %c0_i32_1 : i32, i32, i32
  }
  func.func @transform_11(%arg0: i32) -> (i32, i32, i32) {
    %c0_i32 = arith.constant 0 : i32
    %c0_i32_0 = arith.constant 0 : i32
    %c0_i32_1 = arith.constant 0 : i32
    %c0_i32_2 = arith.constant 0 : i32
    return %c0_i32, %c0_i32_0, %c0_i32_1 : i32, i32, i32
  }
  func.func @transform_12(%arg0: i32) -> (i32, i32, i32) {
    %c0_i32 = arith.constant 0 : i32
    %c0_i32_0 = arith.constant 0 : i32
    %c0_i32_1 = arith.constant 0 : i32
    %c0_i32_2 = arith.constant 0 : i32
    return %c0_i32, %c0_i32_0, %c0_i32_1 : i32, i32, i32
  }
  func.func @transform_13(%arg0: i32) -> (i32, i32, i32) {
    %c0_i32 = arith.constant 0 : i32
    %c0_i32_0 = arith.constant 0 : i32
    %c0_i32_1 = arith.constant 0 : i32
    %c0_i32_2 = arith.constant 0 : i32
    return %c0_i32, %c0_i32_0, %c0_i32_1 : i32, i32, i32
  }
  func.func @transform_14(%arg0: i32) -> (i32, i32, i32) {
    %c0_i32 = arith.constant 0 : i32
    %c0_i32_0 = arith.constant 0 : i32
    %c0_i32_1 = arith.constant 0 : i32
    %c0_i32_2 = arith.constant 0 : i32
    return %c0_i32, %c0_i32_0, %c0_i32_1 : i32, i32, i32
  }
  func.func @transform_15(%arg0: i32) -> (i32, i32, i32) {
    %c0_i32 = arith.constant 0 : i32
    %c0_i32_0 = arith.constant 0 : i32
    %c0_i32_1 = arith.constant 0 : i32
    %c0_i32_2 = arith.constant 0 : i32
    return %c0_i32, %c0_i32_0, %c0_i32_1 : i32, i32, i32
  }
  func.func @transform_16(%arg0: i32) -> (i32, i32, i32) {
    %c0_i32 = arith.constant 0 : i32
    %c0_i32_0 = arith.constant 0 : i32
    %c0_i32_1 = arith.constant 0 : i32
    %c0_i32_2 = arith.constant 0 : i32
    return %c0_i32, %c0_i32_0, %c0_i32_1 : i32, i32, i32
  }
  func.func @transform_17(%arg0: i32) -> (i32, i32) {
    %c0_i32 = arith.constant 0 : i32
    %c0_i32_0 = arith.constant 0 : i32
    %c0_i32_1 = arith.constant 0 : i32
    return %c0_i32, %c0_i32_0 : i32, i32
  }
  func.func @transform_18(%arg0: i32) -> (i32, i32) {
    %c0_i32 = arith.constant 0 : i32
    %c0_i32_0 = arith.constant 0 : i32
    %c0_i32_1 = arith.constant 0 : i32
    return %c0_i32, %c0_i32_0 : i32, i32
  }
  func.func @transform_19(%arg0: i32) -> (i32, i32, i32) {
    %c0_i32 = arith.constant 0 : i32
    %c0_i32_0 = arith.constant 0 : i32
    %c0_i32_1 = arith.constant 0 : i32
    return %arg0, %c0_i32, %c0_i32_0 : i32, i32, i32
  }
}

</mosaic_0001>

<bundles_post_ra>
// kernel: vit_forward.1
= control target key start
LH: loop header
LB: loop body
LE: loop exit
PB: predicated region body
PF: predicated region fallthrough
CT: control target
= control target key end

     0   :  { %s3476_s0 = inlined_call_operand.vmem [shape: bf16[2,24,64], index: 0, kind: input, shape index: {}]   ;;  %s3477_s1 = inlined_call_operand.vmem [shape: bf16[64,32], index: 1, kind: input, shape index: {}]   ;;  %s3478_s2 = inlined_call_operand.vmem [shape: f32[24,32], index: 2, kind: input, shape index: {}]   ;;  %s3479_s3 = inlined_call_operand.vmem [shape: f32[192,32], index: 3, kind: input, shape index: {}]   ;;  %s3480_s4 = inlined_call_operand.vmem [shape: f32[1,24], index: 4, kind: input, shape index: {}]   ;;  %s3481_s5 = inlined_call_operand.vmem [shape: bf16[6,32,96], index: 5, kind: input, shape index: {}]   ;;  %s3482_s6 = inlined_call_operand.vmem [shape: f32[6,1,96], index: 6, kind: input, shape index: {}]   ;;  %s3483_s7 = inlined_call_operand.vmem [shape: bf16[6,32,32], index: 7, kind: input, shape index: {}]   ;;  %s3484_s8 = inlined_call_operand.vmem [shape: f32[6,1,32], index: 8, kind: input, shape index: {}]   ;;  %s3485_s9 = inlined_call_operand.vmem [shape: f32[6,1,32], index: 9, kind: input, shape index: {}]   ;;  %s3486_s10 = inlined_call_operand.vmem [shape: f32[6,1,32], index: 10, kind: input, shape index: {}]   ;;  %s3487_s11 = inlined_call_operand.vmem [shape: f32[6,1,32], index: 11, kind: input, shape index: {}]   ;;  %s3488_s12 = inlined_call_operand.vmem [shape: f32[6,1,32], index: 12, kind: input, shape index: {}]   ;;  %s3489_s13 = inlined_call_operand.vmem [shape: bf16[6,32,64], index: 13, kind: input, shape index: {}]   ;;  %s3490_s14 = inlined_call_operand.vmem [shape: f32[6,1,64], index: 14, kind: input, shape index: {}]   ;;  %s3491_s15 = inlined_call_operand.vmem [shape: bf16[6,64,32], index: 15, kind: input, shape index: {}]   ;;  %s3492_s16 = inlined_call_operand.vmem [shape: f32[6,1,32], index: 16, kind: input, shape index: {}]   ;;  %s3493_s17 = inlined_call_operand.vmem [shape: bf16[32,10], index: 17, kind: input, shape index: {}]   ;;  %s3494_s18 = inlined_call_operand.vmem [shape: f32[1,10], index: 18, kind: input, shape index: {}]   ;;  %s3495_s19 = inlined_call_operand.hbm [shape: f32[2,1,10], index: 19, kind: output, shape index: {}]  }
   0x1   :  { %3513 = sst [smem:[#allocation18_spill]] %s3476_s0 }
   0x2   :  { %3514 = sst [smem:[#allocation19_spill]] %s3477_s1 }
   0x3   :  { %3515 = sst [smem:[#allocation20_spill]] %s3478_s2 }
   0x4   :  { %3516 = sst [smem:[#allocation21_spill]] %s3479_s3 }
   0x5   :  { %3517 = sst [smem:[#allocation22_spill]] %s3480_s4 }
   0x6   :  { %3518 = sst [smem:[#allocation23_spill]] %s3494_s18 }
   0x7   :  { %3519 = sst [smem:[#allocation24_spill]] %s3495_s19 }
   0x8   :  { %24 = vsyncpa [#allocation3], 0 }
   0x9   :  { %26 = vsyncpa [#allocation3 + $0x1], 0  ;;  %s2747_s0 = smov 0   ;;  %s2749_s30 = smov 0  }
   0xa   :  { %s2751_s20 = smov 0   ;;  %s2753_s21 = smov 0  }
   0xb LB: > { %3520 = sst [smem:[#allocation5_spill]] %s2612_s0  ;;  %s2768_s1 = sadd.s32 4294967295, %s2624_s21   ;;  %s2624_s21 = sphi %s2753_s21, %s3559_s21   ;;  %s2620_s20 = sphi %s2751_s20, %s3561_s20   ;;  %s2616_s30 = sphi %s2749_s30, %s3563_s30   ;;  %s2612_s0 = sphi %s2747_s0, %s3562_s0  }
   0xc   : > { %3521 = sst [smem:[#allocation6_spill]] %s2620_s20  ;;  %s2094_s22 = sadd.s32 4294967294, %s2624_s21  }
   0xd   : > { %3522 = sst [smem:[#allocation7_spill]] %s2624_s21  ;;  %s2772_s2 = sadd.s32 1, %s2624_s21  }
   0xe   : > { %3523 = sst [smem:[#allocation8_spill]] %s2768_s1  ;;  %s443_s23 = sadd.s32 1, %s2620_s20 }
   0xf   : > { %3524 = sst [smem:[#allocation9_spill]] %s2772_s2  ;;  %s440_s24 = ssub.s32 %s2624_s21, %s2772_s2 }
  0x10   : > { %p453_p0 = scmp.ne.s32.totalorder %s2620_s20, %s2616_s30  ;;  %p441_p1 = scmp.eq.s32.totalorder %s440_s24, 0 }
  0x11   : > { %p454_p2 = scmp.eq.s32.totalorder %s2768_s1, 1  ;;  %p459_p3 = scmp.ne.s32.totalorder %s2616_s30, %s2612_s0 }
  0x12   : > { %p460_p4 = scmp.eq.s32.totalorder %s2094_s22, 1  ;;  %p2097_p7 = scmp.ge.s32.totalorder %s2624_s21, 1 }
  0x13   : > { %s2783_s25 = scalar_select %p441_p1, %s2620_s20, %s443_s23  }
  0x14   : > { %p2785_p5 = por %p454_p2, %p453_p0  ;;  %p2789_p6 = por %p460_p4, %p459_p3 }
  0x15   : > { %3525 = sst [smem:[#allocation10_spill]] %s2783_s25  ;;  %p540_p8 = scmp.lt.s32.totalorder %s2624_s21, 3 }
  0x16   : > { %s3526_s3 = scalar_select %p2785_p5, 1, 0 }
  0x17   : > { %s3528_s26 = scalar_select %p2789_p6, 1, 0 }
  0x18   : > { %3527 = sst [smem:[#allocation11_spill]] %s3526_s3  ;;  %p541_p9 = pnand %p2097_p7, %p540_p8 }
  0x19   : > { %3529 = sst [smem:[#allocation12_spill]] %s3528_s26 }
  0x1a   : > { %544 = sbr.rel (%p541_p9) target bundleno = 3011 (0xbc3), region = 96 }
  0x21   : > { %s3530_s22 = sld [smem:[#allocation21_spill]]  ;;  %p595_p10 = scmp.lt.s32.totalorder %s2768_s1, 1  ;;  %vm672_vm0 = vcmask 523264  }
  0x22   : > { %s3532_s4 = sld [smem:[#allocation22_spill]]  ;;  %s3534_s0 = sld [smem:[#allocation19_spill]] }
  0x23   : > { %s596_s27 = scalar_select %p595_p10, %s2768_s1, 1 }
  0x24   : > { %s3536_s18 = sld [smem:[#allocation18_spill]]  ;;  %s2959_s26 = smov 0  }
  0x25   : > { %s2344_s20 = smul.u32 12, %s596_s27 }
  0x27   : > { %v2799_v0 = vld [vmem:[%s3530_s22] sm:$0xff]  ;;  %v2804_v1 = vld [vmem:[%s3530_s22 + $0x8] sm:$0xff]  ;;  %v2809_v2 = vld [vmem:[%s3530_s22 + $0x10] sm:$0xff] }
  0x28   : > { %v2815_v3 = vld [vmem:[%s3530_s22 + $0x18] sm:$0xff]  ;;  %v2820_v4 = vld [vmem:[%s3530_s22 + $0x20] sm:$0xff]  ;;  %v2825_v5 = vld [vmem:[%s3530_s22 + $0x28] sm:$0xff]  ;;  %s3535_s25 = smov %s3534_s0 }
  0x29   : > { %v2830_v6 = vld [vmem:[%s3530_s22 + $0x30] sm:$0xff]  ;;  %v2835_v7 = vld [vmem:[%s3530_s22 + $0x38] sm:$0xff]  ;;  %v2840_v8 = vld [vmem:[%s3530_s22 + $0x40] sm:$0xff] }
  0x2a   : > { %v2846_v9 = vld [vmem:[%s3530_s22 + $0x48] sm:$0xff]  ;;  %v2851_v10 = vld [vmem:[%s3530_s22 + $0x50] sm:$0xff]  ;;  %v2856_v11 = vld [vmem:[%s3530_s22 + $0x58] sm:$0xff]  ;;  %s599_s1 = scalar_lea.vmem %s3536_s18, %s2344_s20  ;;  %s3537_s20 = sld [smem:[#allocation20_spill]] }
  0x2b   : > { %v2861_v12 = vld [vmem:[%s3530_s22 + $0x60] sm:$0xff]  ;;  %v2866_v13 = vld [vmem:[%s3530_s22 + $0x68] sm:$0xff]  ;;  %v2871_v14 = vld [vmem:[%s3530_s22 + $0x70] sm:$0xff] }
  0x2c   : > { %v2876_v15 = vld [vmem:[%s3530_s22 + $0x78] sm:$0xff]  ;;  %v2881_v16 = vld [vmem:[%s3530_s22 + $0x80] sm:$0xff]  ;;  %v2886_v17 = vld [vmem:[%s3530_s22 + $0x88] sm:$0xff] }
  0x2d   : > { %v2891_v18 = vld [vmem:[%s3530_s22 + $0x90] sm:$0xff]  ;;  %v2896_v19 = vld [vmem:[%s3530_s22 + $0x98] sm:$0xff]  ;;  %v2901_v20 = vld [vmem:[%s3530_s22 + $0xa0] sm:$0xff] }
  0x2e   : > { %v2906_v21 = vld [vmem:[%s3530_s22 + $0xa8] sm:$0xff]  ;;  %v2911_v22 = vld [vmem:[%s3530_s22 + $0xb0] sm:$0xff]  ;;  %v2916_v23 = vld [vmem:[%s3530_s22 + $0xb8] sm:$0xff] }
  0x2f   : > { %3531 = vst [vmem:[#allocation13_spill] sm:$0xff] %v2906_v21  ;;  %v2921_v24 = vld [vmem:[%s3532_s4] ss:$0 sm:$0xff]  ;;  %v2421_v26 = vld [vmem:[%s3535_s25 + $0x8] sm:$0xff]   ;;  %v2422_v27 = vld [vmem:[%s3535_s25 + $0x10] sm:$0xff]  }
  0x30   : > { %3533 = vst [vmem:[#allocation14_spill] sm:$0xff] %v2921_v24  ;;  %v2420_v25 = vld [vmem:[%s3534_s0] sm:$0xff]   ;;  %v2423_v29 = vld [vmem:[%s3535_s25 + $0x18] sm:$0xff]   ;;  %v2425_v30 = vld [vmem:[%s599_s1 + $0x8] ss:$0 sps:$4 sm:$0xff]   ;;  %s3538_s23 = smov %s3537_s20 }
  0x31   : > { %2229 = vmatprep.subr.bf16.mxu0 %v2420_v25  ;;  %v2424_v28 = vld [vmem:[%s599_s1] sm:$0xff]   ;;  %v606_v31 = vld [vmem:[%s3537_s20 + $0x10] sm:$0xff]  ;;  %v605_v36 = vld [vmem:[%s3538_s23 + $0x8] sm:$0xff]  ;;  %s3539_s1 = sand.u32 1, %s2616_s30  }
  0x32   : > { %2230 = vmatpush3.bf16.msra.mxu0 %v2420_v25  ;;  %2237 = vmatprep.mubr.msk.bf16.mxu0 %vm672_vm0, %v2424_v28  ;;  %v604_v32 = vld [vmem:[%s3538_s23] sm:$0xff]  ;;  %s2951_s21 = scalar_lea.vmem [#allocation2], %s3539_s1 }
  0x33   : > { %2231 = vmatprep.subr.bf16.mxu0 %v2421_v26 }
  0x36   : > { %2232 = vmatpush3.bf16.msra.mxu0 %v2421_v26 }
  0x37   : > { %2233 = vmatprep.subr.bf16.mxu0 %v2422_v27 }
  0x3a   : > { %2234 = vmatpush3.bf16.msra.mxu0 %v2422_v27 }
  0x3b   : > { %2235 = vmatprep.subr.bf16.mxu0 %v2423_v29 }
  0x3e   : > { %2236 = vmatpush3.bf16.msra.mxu0 %v2423_v29 }
  0x41   : > { %2238 = vmatmul.mubr.msk.bf16.vlgmr.msra.gmra.mrb[0].mxu0 %vm672_vm0, %v2425_v30 }
 0x114   : > { %v2239_v33 = vpop.f32.mrb[0].mxu0 }
 0x115   : > { %v722_v34 = vadd.f32 %v2239_v33, %v606_v31   ;;  %v713_v35 = vpop.f32.mrb[1].mxu0 }
 0x116   : > { %v714_v37 = vadd.f32 %v713_v35, %v604_v32   ;;  %v2240_v38 = vpop.f32.mrb[2].mxu0 }
 0x117   : > { %v716_v39 = vpop.f32.mrb[3].mxu0 }
 0x118   : > { %v717_v40 = vadd.f32 %v716_v39, %v605_v36  }
 0x119 LB: >> { %v3540_v24 = vld [vmem:[#allocation14_spill] sm:$0xff]  ;;  %3541 = vst [vmem:[#allocation15_spill] sm:$0xff] %v2628_v34  ;;  %3542 = vst [vmem:[#allocation16_spill] sm:$0xff] %v2632_v40  ;;  %vm765_vm1 = vcmask 261120   ;;  %s2974_s28 = sshll.u32 %s2640_s26, 4  ;;  %v736_v41 = vpack.c.bf16 %v2632_v40, %v2636_v37  ;;  %v737_v44 = vpack.c.bf16 %v2628_v34, %v2628_v34  ;;  %s745_s27 = scalar_lea.vmem %s3482_s6, %s2640_s26  ;;  %v3544_v21 = vld [vmem:[#allocation13_spill] sm:$0xff]  ;;  %v2628_v34 = vphi %v722_v34, %v1931_v34   ;;  %s2640_s26 = sphi %s2959_s26, %s732_s26   ;;  %v2636_v37 = vphi %v714_v37, %v3549_v37   ;;  %v2632_v40 = vphi %v717_v40, %v1930_v40  }
 0x11a   : >> { %3543 = vst [vmem:[#allocation17_spill] sm:$0xff] %v2636_v37  ;;  %s740_s18 = scalar_lea.vmem %s3481_s5, %s2974_s28  ;;  %v2109_v45 = vld [vmem:[%s745_s27] ss:$0 sm:$0xff]  ;;  %s2642_s24 = smov 96   ;;  %vm1041_vm2 = vcmask 195584   ;;  %vm1359_vm3 = vcmask 1043456  }
 0x11b   : >> { %v2426_v42 = vld [vmem:[%s740_s18] sm:$0xff]   ;;  %2245 = vmatprep.mubr.msk.bf16.mxu1 %vm765_vm1, %v736_v41  ;;  %v2427_v43 = vld [vmem:[%s740_s18 + $0x8] sm:$0xff]   ;;  %s2643_s0 = smov 64   ;;  %s1540_s29 = scalar_lea.vmem %s3483_s7, %s2974_s28 }
 0x11c   : >> { %2241 = vmatprep.subr.bf16.mxu1 %v2426_v42  ;;  %s1545_s3 = scalar_lea.vmem %s3484_s8, %s2640_s26  ;;  %s1622_s18 = scalar_lea.vmem %s3485_s9, %s2640_s26 }
 0x11d   : >> { %2242 = vmatpush3.bf16.msra.mxu1 %v2426_v42  ;;  %s1624_s27 = scalar_lea.vmem %s3486_s10, %s2640_s26 }
 0x11e   : >> { %2243 = vmatprep.subr.bf16.mxu1 %v2427_v43 }
 0x121   : >> { %2244 = vmatpush3.bf16.msra.mxu1 %v2427_v43 }
 0x124   : >> { %2246 = vmatmul.mubr.msk.bf16.vlgmr.msra.gmra.mrb[0].mxu1 %vm765_vm1, %v737_v44 }
 0x1f7   : >> { %v2247_v46 = vpop.f32.mrb[0].mxu1 }
 0x1f8   : >> { %v815_v47 = vadd.f32 %v2247_v46, %v2109_v45  ;;  %v806_v48 = vpop.f32.mrb[1].mxu1 }
 0x1f9   : >> { %v807_v49 = vadd.f32 %v2109_v45, %v806_v48  ;;  %v2248_v50 = vpop.f32.mrb[2].mxu1 }
 0x1fa   : >> { %v809_v51 = vpop.f32.mrb[3].mxu1  ;;  %v2990_v52 = vpack.c.bf16 %v815_v47, %v815_v47  ;;  %v824_v53 = vmul.f32 %v815_v47, %v2809_v2  ;;  %v827_v54 = vmul.f32 %v815_v47, %v2825_v5  ;;  %v830_v55 = vmul.f32 %v815_v47, %v2840_v8 }
 0x1fb   : >> { %v810_v56 = vadd.f32 %v2109_v45, %v809_v51  ;;  %v822_v57 = vmul.f32 %v807_v49, %v2799_v0  ;;  %v825_v58 = vmul.f32 %v807_v49, %v2815_v3  ;;  %v828_v59 = vmul.f32 %v807_v49, %v2830_v6 }
 0x1fc   : >> { %v831_v60 = vmul.f32 %v807_v49, %v2846_v9  ;;  %v833_v61 = vmul.f32 %v815_v47, %v2856_v11  ;;  %v834_v62 = vmul.f32 %v807_v49, %v2861_v12  ;;  %v836_v63 = vmul.f32 %v815_v47, %v2871_v14 }
 0x1fd   : >> { %v3002_v25 = vpack.c.bf16 %v810_v56, %v807_v49  ;;  %v823_v26 = vmul.f32 %v810_v56, %v2804_v1  ;;  %v847_v27 = vpack.c.bf16 %v825_v58, %v824_v53  ;;  %v826_v28 = vmul.f32 %v810_v56, %v2820_v4 }
 0x1fe   : >> { %v829_v29 = vmul.f32 %v810_v56, %v2835_v7  ;;  %v850_v30 = vpack.c.bf16 %v831_v60, %v830_v55  ;;  %v832_v31 = vmul.f32 %v810_v56, %v2851_v10  ;;  %v835_v32 = vmul.f32 %v810_v56, %v2866_v13 }
 0x1ff   : >> { %866 = vrot.lane.b32.xlu0 %v3002_v25, %s2642_s24  ;;  %v846_v33 = vpack.c.bf16 %v823_v26, %v822_v57  ;;  %v848_v35 = vpack.c.bf16 %v827_v54, %v826_v28  ;;  %v837_v36 = vmul.f32 %v807_v49, %v2876_v15  ;;  %v838_v38 = vmul.f32 %v810_v56, %v2881_v16 }
 0x200   : >> { %v849_v39 = vpack.c.bf16 %v829_v29, %v828_v59  ;;  %v851_v41 = vpack.c.bf16 %v833_v61, %v832_v31  ;;  %v852_v42 = vpack.c.bf16 %v835_v32, %v834_v62  ;;  %v839_v43 = vmul.f32 %v815_v47, %v2886_v17 }
 0x201   : >> { %2253 = vmatprep.mubr.msk.bf16.mxu1 %vm765_vm1, %v846_v33  ;;  %v853_v44 = vpack.c.bf16 %v837_v36, %v836_v63  ;;  %v840_v45 = vmul.f32 %v807_v49, %v2891_v18  ;;  %v841_v46 = vmul.f32 %v810_v56, %v2896_v19  ;;  %v842_v48 = vmul.f32 %v815_v47, %v2901_v20 }
 0x202   : >> { %v854_v50 = vpack.c.bf16 %v839_v43, %v838_v38  ;;  %v843_v51 = vmul.f32 %v807_v49, %v3544_v21  ;;  %v844_v53 = vmul.f32 %v810_v56, %v2911_v22  ;;  %v845_v54 = vmul.f32 %v815_v47, %v2916_v23 }
 0x203   : >> { %868 = vrot.lane.b32.xlu0 %v2990_v52, %s2642_s24  ;;  %v855_v55 = vpack.c.bf16 %v841_v46, %v840_v45  ;;  %s1687_s24 = scalar_lea.vmem %s3489_s13, %s2974_s28  ;;  %s2173_s28 = sshll.u32 %s2640_s26, 5 }
 0x204   : >> { %v856_v57 = vpack.c.bf16 %v843_v51, %v842_v48  ;;  %v857_v58 = vpack.c.bf16 %v845_v54, %v844_v53  ;;  %s3367_s1 = scalar_lea.vmem %s3491_s15, %s2173_s28 }
 0x271   : >> { %v867_v59 = vpop.permute.xlu0 %866 }
 0x272   : >> { %v907_v60 = vsel %vm765_vm1, %v867_v59, 0  ;;  %2341 = vmatprep.subr.msk.bf16.mxu1 %vm765_vm1, %v867_v59 }
 0x273   : >> { %2250 = vmatpush3.bf16.xpose.msra.mxu1 %v907_v60 }
 0x275   : >> { %v869_v61 = vpop.permute.xlu0 %868 }
 0x276   : >> { %2342 = vmatprep.subr.msk.bf16.mxu1 %vm765_vm1, %v869_v61  ;;  %v910_v49 = vsel %vm765_vm1, %v869_v61, 0 }
 0x27b   : >> { %2252 = vmatpush3.bf16.xpose.msra.mxu1 %v910_v49 }
 0x282   : >> { %2254 = vmatmul.mubr.msk.bf16.vlgmr.msra.gmra.mrb[4].mxu1 %vm765_vm1, %v847_v27 }
 0x283   : >> { %2257 = vmatprep.mubr.msk.bf16.mxu1 %vm765_vm1, %v848_v35 }
 0x28a   : >> { %2258 = vmatmul.mubr.msk.bf16.gmra.mrb[8].mxu1 %vm765_vm1, %v849_v39 }
 0x28b   : >> { %2261 = vmatprep.mubr.msk.bf16.mxu1 %vm765_vm1, %v850_v30 }
 0x292   : >> { %2262 = vmatmul.mubr.msk.bf16.gmra.mrb[12].mxu1 %vm765_vm1, %v851_v41 }
 0x293   : >> { %2265 = vmatprep.mubr.msk.bf16.mxu1 %vm765_vm1, %v852_v42 }
 0x29a   : >> { %2266 = vmatmul.mubr.msk.bf16.gmra.mrb[16].mxu1 %vm765_vm1, %v853_v44 }
 0x29b   : >> { %2269 = vmatprep.mubr.msk.bf16.mxu1 %vm765_vm1, %v854_v50 }
 0x2a2   : >> { %2270 = vmatmul.mubr.msk.bf16.gmra.mrb[20].mxu1 %vm765_vm1, %v855_v55 }
 0x2a3   : >> { %2273 = vmatprep.mubr.msk.bf16.mxu1 %vm765_vm1, %v856_v57 }
 0x2aa   : >> { %2274 = vmatmul.mubr.msk.bf16.gmra.mrb[24].mxu1 %vm765_vm1, %v857_v58 }
 0x355   : >> { %v2255_v47 = vpop.f32.mrb[4].mxu1 }
 0x356   : >> { %v3037_v56 = vadd.f32 %v2255_v47, %v3540_v24  ;;  %v946_v62 = vpop.f32.mrb[5].mxu1 }
 0x357   : >> { %v3040_v63 = vadd.f32 %v3540_v24, %v946_v62  ;;  %v2256_v26 = vpop.f32.mrb[6].mxu1 }
 0x358   : >> { %v949_v27 = vpop.f32.mrb[7].mxu1  ;;  %v1048_v28 = vsel %vm1041_vm2, %v3037_v56, -inf  ;;  %v3045_v29 = vadd.f32 %v2256_v26, %v3540_v24 }
 0x359   : >> { %1049 = vmax.xlane.f32.xlu0 %v1048_v28  ;;  %v1042_v30 = vsel %vm1041_vm2, %v3040_v63, -inf  ;;  %v3050_v31 = vadd.f32 %v3540_v24, %v949_v27 }
 0x35a   : >> { %1043 = vmax.xlane.f32.xlu1 %v1042_v30  ;;  %v1051_v33 = vsel %vm1041_vm2, %v3045_v29, -inf }
 0x35b   : >> { %v1045_v41 = vsel %vm1041_vm2, %v3050_v31, -inf }
 0x35d   : >> { %v2259_v32 = vpop.f32.mrb[8].mxu1 }
 0x35e   : >> { %v962_v35 = vpop.f32.mrb[9].mxu1  ;;  %1052 = vmax.xlane.f32.xlu1 %v1051_v33  ;;  %v3055_v39 = vadd.f32 %v2259_v32, %v3540_v24 }
 0x35f   : >> { %v2260_v36 = vpop.f32.mrb[10].mxu1  ;;  %v3060_v42 = vadd.f32 %v3540_v24, %v962_v35 }
 0x360   : >> { %v965_v38 = vpop.f32.mrb[11].mxu1  ;;  %v1060_v44 = vsel %vm1041_vm2, %v3055_v39, -inf  ;;  %v3068_v51 = vadd.f32 %v2260_v36, %v3540_v24 }
 0x361   : >> { %v1054_v53 = vsel %vm1041_vm2, %v3060_v42, -inf  ;;  %v3075_v55 = vadd.f32 %v3540_v24, %v965_v38 }
 0x362   : >> { %1046 = vmax.xlane.f32.xlu1 %v1045_v41  ;;  %v1063_v58 = vsel %vm1041_vm2, %v3068_v51, -inf }
 0x363   : >> { %v1057_v62 = vsel %vm1041_vm2, %v3075_v55, -inf }
 0x365   : >> { %v2263_v43 = vpop.f32.mrb[12].mxu1 }
 0x366   : >> { %v978_v45 = vpop.f32.mrb[13].mxu1  ;;  %1061 = vmax.xlane.f32.xlu1 %v1060_v44  ;;  %v3080_v49 = vadd.f32 %v2263_v43, %v3540_v24 }
 0x367   : >> { %v2264_v46 = vpop.f32.mrb[14].mxu1  ;;  %v3093_v28 = vadd.f32 %v3540_v24, %v978_v45 }
 0x368   : >> { %v3065_v48 = vadd.f32 %v2264_v46, %v3540_v24  ;;  %v981_v50 = vpop.f32.mrb[15].mxu1  ;;  %v1072_v32 = vsel %vm1041_vm2, %v3080_v49, -inf }
 0x369   : >> { %v3100_v41 = vadd.f32 %v3540_v24, %v981_v50  ;;  %v1066_v44 = vsel %vm1041_vm2, %v3093_v28, -inf }
 0x36a   : >> { %1055 = vmax.xlane.f32.xlu1 %v1054_v53  ;;  %v1075_v54 = vsel %vm1041_vm2, %v3065_v48, -inf }
 0x36b   : >> { %1076 = vmax.xlane.f32.xlu0 %v1075_v54  ;;  %v1069_v50 = vsel %vm1041_vm2, %v3100_v41, -inf }
 0x36d   : >> { %v2267_v57 = vpop.f32.mrb[16].mxu1 }
 0x36e   : >> { %v994_v59 = vpop.f32.mrb[17].mxu1  ;;  %1064 = vmax.xlane.f32.xlu1 %v1063_v58  ;;  %v3113_v53 = vadd.f32 %v2267_v57, %v3540_v24 }
 0x36f   : >> { %v2268_v60 = vpop.f32.mrb[18].mxu1 }
 0x370   : >> { %v997_v61 = vpop.f32.mrb[19].mxu1  ;;  %v3088_v26 = vadd.f32 %v2268_v60, %v3540_v24  ;;  %v1084_v57 = vsel %vm1041_vm2, %v3113_v53, -inf }
 0x371   : >> { %v3083_v47 = vadd.f32 %v3540_v24, %v997_v61 }
 0x372   : >> { %1058 = vmax.xlane.f32.xlu1 %v1057_v62  ;;  %v1087_v36 = vsel %vm1041_vm2, %v3088_v26, -inf }
 0x373   : >> { %v1081_v27 = vsel %vm1041_vm2, %v3083_v47, -inf }
 0x374   : >> { %1082 = vmax.xlane.f32.xlu0 %v1081_v27  ;;  %v3120_v27 = vadd.f32 %v3540_v24, %v994_v59 }
 0x375   : >> { %v2271_v30 = vpop.f32.mrb[20].mxu1 }
 0x376   : >> { %v1010_v33 = vpop.f32.mrb[21].mxu1  ;;  %1073 = vmax.xlane.f32.xlu1 %v1072_v32  ;;  %v1078_v59 = vsel %vm1041_vm2, %v3120_v27, -inf }
 0x377   : >> { %v2272_v35 = vpop.f32.mrb[22].mxu1 }
 0x378   : >> { %v1013_v38 = vpop.f32.mrb[23].mxu1  ;;  %1088 = vmax.xlane.f32.xlu0 %v1087_v36  ;;  %v3108_v45 = vadd.f32 %v2272_v35, %v3540_v24 }
 0x379   : >> { %v3103_v43 = vadd.f32 %v3540_v24, %v1013_v38  ;;  %v3133_v38 = vadd.f32 %v2271_v30, %v3540_v24 }
 0x37a   : >> { %1067 = vmax.xlane.f32.xlu1 %v1066_v44  ;;  %v1099_v61 = vsel %vm1041_vm2, %v3108_v45, -inf }
 0x37b   : >> { %v1093_v46 = vsel %vm1041_vm2, %v3103_v43, -inf }
 0x37c   : >> { %1094 = vmax.xlane.f32.xlu0 %v1093_v46  ;;  %v3140_v46 = vadd.f32 %v3540_v24, %v1010_v33 }
 0x37d   : >> { %v2275_v54 = vpop.f32.mrb[24].mxu1 }
 0x37e   : >> { %v1026_v58 = vpop.f32.mrb[25].mxu1  ;;  %1070 = vmax.xlane.f32.xlu1 %v1069_v50  ;;  %v1096_v50 = vsel %vm1041_vm2, %v3133_v38, -inf  ;;  %v1090_v30 = vsel %vm1041_vm2, %v3140_v46, -inf }
 0x37f   : >> { %v2276_v60 = vpop.f32.mrb[26].mxu1 }
 0x380   : >> { %v1029_v62 = vpop.f32.mrb[27].mxu1  ;;  %1100 = vmax.xlane.f32.xlu0 %v1099_v61  ;;  %v3128_v35 = vadd.f32 %v2276_v60, %v3540_v24  ;;  %v3145_v60 = vadd.f32 %v2275_v54, %v3540_v24  ;;  %v3150_v61 = vadd.f32 %v3540_v24, %v1026_v58 }
 0x381   : >> { %v3123_v32 = vadd.f32 %v3540_v24, %v1029_v62 }
 0x382   : >> { %1085 = vmax.xlane.f32.xlu1 %v1084_v57  ;;  %v1111_v44 = vsel %vm1041_vm2, %v3128_v35, -inf  ;;  %v1108_v62 = vsel %vm1041_vm2, %v3145_v60, -inf  ;;  %v1102_v33 = vsel %vm1041_vm2, %v3150_v61, -inf }
 0x383   : >> { %v1105_v36 = vsel %vm1041_vm2, %v3123_v32, -inf }
 0x384   : >> { %1106 = vmax.xlane.f32.xlu0 %v1105_v36 }
 0x386   : >> { %1079 = vmax.xlane.f32.xlu1 %v1078_v59 }
 0x388   : >> { %1112 = vmax.xlane.f32.xlu0 %v1111_v44 }
 0x38a   : >> { %1097 = vmax.xlane.f32.xlu1 %v1096_v50 }
 0x38e   : >> { %1091 = vmax.xlane.f32.xlu1 %v1090_v30 }
 0x392   : >> { %1109 = vmax.xlane.f32.xlu1 %v1108_v62 }
 0x396   : >> { %1103 = vmax.xlane.f32.xlu1 %v1102_v33 }
 0x3a7   : >> { %1318 = vrot.lane.b32.xlu1 %v3002_v25, %s2643_s0 }
 0x3e6   : >> { %v1050_v54 = vpop.xlane.xlu0 %1049 }
 0x3e7   : >> { %v1116_v57 = vsub.f32 %v3037_v56, %v1050_v54  ;;  %v1044_v36 = vpop.xlane.xlu1 %1043 }
 0x3e8   : >> { %v1114_v59 = vsub.f32 %v3040_v63, %v1044_v36 }
 0x3e9   : >> { %v1142_v58 = vmul.f32 1.442695, %v1116_v57 }
 0x3ea   : >> { %v1138_v44 = vmul.f32 1.442695, %v1114_v59 }
 0x3eb   : >> { %2436 = vpow2.f32 %v1142_v58  ;;  %v1053_v50 = vpop.xlane.xlu1 %1052 }
 0x3ec   : >> { %v1117_v30 = vsub.f32 %v3045_v29, %v1053_v50  ;;  %2438 = vpow2.f32 %v1138_v44 }
 0x3ee   : >> { %v1144_v62 = vmul.f32 1.442695, %v1117_v30 }
 0x3ef   : >> { %v1047_v24 = vpop.xlane.xlu1 %1046 }
 0x3f0   : >> { %2440 = vpow2.f32 %v1144_v62  ;;  %v1115_v33 = vsub.f32 %v3050_v31, %v1047_v24 }
 0x3f2   : >> { %v1140_v34 = vmul.f32 1.442695, %v1115_v33 }
 0x3f3   : >> { %v1062_v25 = vpop.xlane.xlu1 %1061 }
 0x3f4   : >> { %2442 = vpow2.f32 %v1140_v34  ;;  %v1120_v56 = vsub.f32 %v3055_v39, %v1062_v25 }
 0x3f5   : >> { %v3163_v54 = vpop.eup %2436 }
 0x3f6   : >> { %v1150_v63 = vmul.f32 1.442695, %v1120_v56  ;;  %v1192_v57 = vsel %vm1041_vm2, %v3163_v54, 0.0  ;;  %v3167_v36 = vpop.eup %2438 }
 0x3f7   : >> { %1193 = vadd.xlane.f32.xlu1 %v1192_v57  ;;  %v1056_v29 = vpop.xlane.xlu1 %1055  ;;  %v1186_v34 = vsel %vm1041_vm2, %v3167_v36, 0.0 }
 0x3f8   : >> { %2444 = vpow2.f32 %v1150_v63  ;;  %v1118_v59 = vsub.f32 %v3060_v42, %v1056_v29  ;;  %v1077_v31 = vpop.xlane.xlu0 %1076 }
 0x3f9   : >> { %v1125_v42 = vsub.f32 %v3065_v48, %v1077_v31 }
 0x3fa   : >> { %v3170_v58 = vpop.eup %2440  ;;  %v1146_v24 = vmul.f32 1.442695, %v1118_v59 }
 0x3fb   : >> { %1187 = vadd.xlane.f32.xlu1 %v1186_v34  ;;  %v1065_v39 = vpop.xlane.xlu1 %1064  ;;  %v1195_v44 = vsel %vm1041_vm2, %v3170_v58, 0.0  ;;  %v1160_v57 = vmul.f32 1.442695, %v1125_v42 }
 0x3fc   : >> { %2446 = vpow2.f32 %v1146_v24  ;;  %v1121_v50 = vsub.f32 %v3068_v51, %v1065_v39  ;;  %1196 = vadd.xlane.f32.xlu0 %v1195_v44 }
 0x3fe   : >> { %v3177_v30 = vpop.eup %2442  ;;  %v1152_v62 = vmul.f32 1.442695, %v1121_v50 }
 0x3ff   : >> { %v1059_v33 = vpop.xlane.xlu1 %1058  ;;  %v1189_v25 = vsel %vm1041_vm2, %v3177_v30, 0.0 }
 0x400   : >> { %2448 = vpow2.f32 %v1152_v62  ;;  %v1119_v56 = vsub.f32 %v3075_v55, %v1059_v33  ;;  %1190 = vadd.xlane.f32.xlu0 %v1189_v25 }
 0x401   : >> { %v1083_v44 = vpop.xlane.xlu0 %1082 }
 0x402   : >> { %v3183_v63 = vpop.eup %2444  ;;  %v1148_v29 = vmul.f32 1.442695, %v1119_v56 }
 0x403   : >> { %v1074_v59 = vpop.xlane.xlu1 %1073  ;;  %v1204_v51 = vsel %vm1041_vm2, %v3183_v63, 0.0 }
 0x404   : >> { %2450 = vpow2.f32 %v1148_v29  ;;  %v1124_v48 = vsub.f32 %v3080_v49, %v1074_v59  ;;  %1205 = vadd.xlane.f32.xlu1 %v1204_v51 }
 0x405   : >> { %2452 = vpow2.f32 %v1160_v57  ;;  %v1089_v57 = vpop.xlane.xlu0 %1088 }
 0x406   : >> { %v3188_v24 = vpop.eup %2446  ;;  %v1158_v34 = vmul.f32 1.442695, %v1124_v48 }
 0x407   : >> { %v1068_v31 = vpop.xlane.xlu1 %1067  ;;  %v1198_v55 = vsel %vm1041_vm2, %v3188_v24, 0.0 }
 0x408   : >> { %2454 = vpow2.f32 %v1158_v34  ;;  %v1122_v39 = vsub.f32 %v3093_v28, %v1068_v31  ;;  %1199 = vadd.xlane.f32.xlu1 %v1198_v55  ;;  %v1129_v34 = vsub.f32 %v3088_v26, %v1089_v57 }
 0x409   : >> { %v1095_v57 = vpop.xlane.xlu0 %1094 }
 0x40a   : >> { %v3193_v50 = vpop.eup %2448  ;;  %v1154_v42 = vmul.f32 1.442695, %v1122_v39 }
 0x40b   : >> { %v1071_v62 = vpop.xlane.xlu1 %1070  ;;  %v1207_v49 = vsel %vm1041_vm2, %v3193_v50, 0.0 }
 0x40c   : >> { %2456 = vpow2.f32 %v1154_v42  ;;  %v1123_v33 = vsub.f32 %v3100_v41, %v1071_v62  ;;  %1208 = vadd.xlane.f32.xlu0 %v1207_v49  ;;  %v1168_v49 = vmul.f32 1.442695, %v1129_v34 }
 0x40e   : >> { %v3198_v25 = vpop.eup %2450  ;;  %v1156_v56 = vmul.f32 1.442695, %v1123_v33 }
 0x40f   : >> { %v1086_v29 = vpop.xlane.xlu1 %1085  ;;  %v1201_v28 = vsel %vm1041_vm2, %v3198_v25, 0.0  ;;  %v3202_v59 = vpop.eup %2452 }
 0x410   : >> { %2458 = vpow2.f32 %v1156_v56  ;;  %v1128_v51 = vsub.f32 %v3113_v53, %v1086_v29  ;;  %1202 = vadd.xlane.f32.xlu0 %v1201_v28  ;;  %v1219_v55 = vsel %vm1041_vm2, %v3202_v59, 0.0  ;;  %v1127_v53 = vsub.f32 %v3083_v47, %v1083_v44 }
 0x412   : >> { %v3205_v48 = vpop.eup %2454  ;;  %v1166_v41 = vmul.f32 1.442695, %v1128_v51  ;;  %v1164_v28 = vmul.f32 1.442695, %v1127_v53 }
 0x413   : >> { %v1080_v31 = vpop.xlane.xlu1 %1079  ;;  %v1216_v39 = vsel %vm1041_vm2, %v3205_v48, 0.0 }
 0x414   : >> { %2460 = vpow2.f32 %v1166_v41  ;;  %v1126_v42 = vsub.f32 %v3120_v27, %v1080_v31  ;;  %1220 = vadd.xlane.f32.xlu0 %v1219_v55  ;;  %1217 = vadd.xlane.f32.xlu1 %v1216_v39  ;;  %v1101_v31 = vpop.xlane.xlu0 %1100 }
 0x415   : >> { %v1133_v53 = vsub.f32 %v3108_v45, %v1101_v31 }
 0x416   : >> { %v3213_v62 = vpop.eup %2456  ;;  %v1162_v33 = vmul.f32 1.442695, %v1126_v42 }
 0x417   : >> { %v1098_v26 = vpop.xlane.xlu1 %1097  ;;  %v1210_v56 = vsel %vm1041_vm2, %v3213_v62, 0.0 }
 0x418   : >> { %2462 = vpow2.f32 %v1162_v33  ;;  %1211 = vadd.xlane.f32.xlu1 %v1210_v56  ;;  %v1132_v44 = vsub.f32 %v3133_v38, %v1098_v26  ;;  %v1176_v38 = vmul.f32 1.442695, %v1133_v53  ;;  %v1107_v45 = vpop.xlane.xlu0 %1106 }
 0x419   : >> { %2464 = vpow2.f32 %v1168_v49  ;;  %v1135_v31 = vsub.f32 %v3123_v32, %v1107_v45 }
 0x41a   : >> { %v3218_v29 = vpop.eup %2458  ;;  %2466 = vpow2.f32 %v1164_v28  ;;  %v1174_v49 = vmul.f32 1.442695, %v1132_v44 }
 0x41b   : >> { %v1092_v27 = vpop.xlane.xlu1 %1091  ;;  %v1213_v51 = vsel %vm1041_vm2, %v3218_v29, 0.0 }
 0x41c   : >> { %v1130_v41 = vsub.f32 %v3140_v46, %v1092_v27  ;;  %1214 = vadd.xlane.f32.xlu0 %v1213_v51 }
 0x41e   : >> { %v3223_v47 = vpop.eup %2460  ;;  %v1170_v34 = vmul.f32 1.442695, %v1130_v41 }
 0x41f   : >> { %v1110_v55 = vpop.xlane.xlu1 %1109  ;;  %v1228_v39 = vsel %vm1041_vm2, %v3223_v47, 0.0 }
 0x420   : >> { %1229 = vadd.xlane.f32.xlu0 %v1228_v39  ;;  %2468 = vpow2.f32 %v1170_v34  ;;  %v1136_v26 = vsub.f32 %v3145_v60, %v1110_v55  ;;  %v1113_v39 = vpop.xlane.xlu0 %1112 }
 0x421   : >> { %2470 = vpow2.f32 %v1174_v49  ;;  %v1180_v49 = vmul.f32 1.442695, %v1135_v31 }
 0x422   : >> { %v3228_v42 = vpop.eup %2462  ;;  %2472 = vpow2.f32 %v1176_v38  ;;  %v1182_v41 = vmul.f32 1.442695, %v1136_v26  ;;  %v1131_v38 = vsub.f32 %v3103_v43, %v1095_v57 }
 0x423   : >> { %v1104_v46 = vpop.xlane.xlu1 %1103  ;;  %v1222_v33 = vsel %vm1041_vm2, %v3228_v42, 0.0  ;;  %v3233_v56 = vpop.eup %2464 }
 0x424   : >> { %1223 = vadd.xlane.f32.xlu0 %v1222_v33  ;;  %v1231_v27 = vsel %vm1041_vm2, %v3233_v56, 0.0  ;;  %v3238_v51 = vpop.eup %2466  ;;  %v1134_v44 = vsub.f32 %v3150_v61, %v1104_v46  ;;  %2474 = vpow2.f32 %v1182_v41  ;;  %v1137_v61 = vsub.f32 %v3128_v35, %v1113_v39 }
 0x425   : >> { %v1225_v60 = vsel %vm1041_vm2, %v3238_v51, 0.0 }
 0x426   : >> { %v1178_v55 = vmul.f32 1.442695, %v1134_v44  ;;  %v1184_v32 = vmul.f32 1.442695, %v1137_v61 }
 0x427   : >> { %v1319_v28 = vpop.permute.xlu1 %1318 }
 0x428   : >> { %1232 = vadd.xlane.f32.xlu0 %v1231_v27  ;;  %2277 = vmatprep.subr.bf16.mxu0 %v1319_v28  ;;  %2476 = vpow2.f32 %v1178_v55  ;;  %v1172_v27 = vmul.f32 1.442695, %v1131_v38 }
 0x429   : >> { %1320 = vrot.lane.b32.xlu1 %v2990_v52, %s2643_s0  ;;  %2278 = vmatpush3.bf16.msra.mxu0 %v1319_v28  ;;  %2478 = vpow2.f32 %v1180_v49  ;;  %s1692_s0 = scalar_lea.vmem %s3490_s14, %s2640_s26 }
 0x42a   : >> { %v3245_v34 = vpop.eup %2468  ;;  %2480 = vpow2.f32 %v1184_v32 }
 0x42b   : >> { %v1234_v53 = vsel %vm1041_vm2, %v3245_v34, 0.0  ;;  %v3250_v52 = vpop.eup %2470  ;;  %2482 = vpow2.f32 %v1172_v27 }
 0x42c   : >> { %1226 = vadd.xlane.f32.xlu0 %v1225_v60  ;;  %v1240_v46 = vsel %vm1041_vm2, %v3250_v52, 0.0  ;;  %v3255_v33 = vpop.eup %2472 }
 0x42d   : >> { %v1243_v26 = vsel %vm1041_vm2, %v3255_v33, 0.0 }
 0x42e   : >> { %v3260_v28 = vpop.eup %2474 }
 0x42f   : >> { %v1252_v35 = vsel %vm1041_vm2, %v3260_v28, 0.0 }
 0x430   : >> { %1235 = vadd.xlane.f32.xlu0 %v1234_v53 }
 0x432   : >> { %v3264_v45 = vpop.eup %2476 }
 0x433   : >> { %v1246_v41 = vsel %vm1041_vm2, %v3264_v45, 0.0  ;;  %v3268_v44 = vpop.eup %2478 }
 0x434   : >> { %1241 = vadd.xlane.f32.xlu0 %v1240_v46  ;;  %v1249_v43 = vsel %vm1041_vm2, %v3268_v44, 0.0  ;;  %v3272_v57 = vpop.eup %2480 }
 0x435   : >> { %v1255_v60 = vsel %vm1041_vm2, %v3272_v57, 0.0  ;;  %v3276_v31 = vpop.eup %2482 }
 0x436   : >> { %v1237_v55 = vsel %vm1041_vm2, %v3276_v31, 0.0 }
 0x438   : >> { %1244 = vadd.xlane.f32.xlu0 %v1243_v26 }
 0x43c   : >> { %1253 = vadd.xlane.f32.xlu0 %v1252_v35 }
 0x440   : >> { %1247 = vadd.xlane.f32.xlu0 %v1246_v41 }
 0x444   : >> { %1250 = vadd.xlane.f32.xlu0 %v1249_v43 }
 0x448   : >> { %1256 = vadd.xlane.f32.xlu0 %v1255_v60 }
 0x44d   : >> { %1238 = vadd.xlane.f32.xlu1 %v1237_v55 }
 0x484   : >> { %v1194_v39 = vpop.xlane.xlu1 %1193 }
 0x488   : >> { %v1188_v53 = vpop.xlane.xlu1 %1187 }
 0x489   : >> { %v1197_v49 = vpop.xlane.xlu0 %1196  ;;  %2484 = vrcp.f32 %v1188_v53 }
 0x48d   : >> { %v1191_v61 = vpop.xlane.xlu0 %1190 }
 0x48e   : >> { %2486 = vrcp.f32 %v1191_v61 }
 0x48f   : >> { %2488 = vrcp.f32 %v1197_v49 }
 0x490   : >> { %2490 = vrcp.f32 %v1194_v39 }
 0x491   : >> { %v1206_v46 = vpop.xlane.xlu1 %1205 }
 0x493   : >> { %v2485_v32 = vpop.eup %2484 }
 0x494   : >> { %v1282_v27 = vmul.f32 %v2485_v32, %v3167_v36 }
 0x495   : >> { %v1200_v41 = vpop.xlane.xlu1 %1199 }
 0x496   : >> { %2492 = vrcp.f32 %v1200_v41 }
 0x498   : >> { %v2487_v38 = vpop.eup %2486 }
 0x499   : >> { %v1209_v26 = vpop.xlane.xlu0 %1208  ;;  %v1283_v35 = vmul.f32 %v2487_v38, %v3177_v30  ;;  %v2489_v53 = vpop.eup %2488 }
 0x49a   : >> { %v2491_v37 = vpop.eup %2490  ;;  %v1285_v30 = vmul.f32 %v2489_v53, %v3170_v58 }
 0x49b   : >> { %v1306_v43 = vpack.c.bf16 %v1283_v35, %v1282_v27 }
 0x49d   : >> { %v1203_v60 = vpop.xlane.xlu0 %1202  ;;  %2281 = vmatprep.mubr.msk.bf16.mxu0 %vm1041_vm2, %v1306_v43 }
 0x49e   : >> { %2494 = vrcp.f32 %v1203_v60 }
 0x49f   : >> { %2496 = vrcp.f32 %v1209_v26  ;;  %v1284_v26 = vmul.f32 %v2491_v37, %v3163_v54 }
 0x4a0   : >> { %2498 = vrcp.f32 %v1206_v46  ;;  %v2493_v21 = vpop.eup %2492 }
 0x4a1   : >> { %v1218_v55 = vpop.xlane.xlu1 %1217  ;;  %v1221_v61 = vpop.xlane.xlu0 %1220  ;;  %v1286_v46 = vmul.f32 %v2493_v21, %v3188_v24  ;;  %v1307_v27 = vpack.c.bf16 %v1285_v30, %v1284_v26 }
 0x4a5   : >> { %v1212_v40 = vpop.xlane.xlu1 %1211 }
 0x4a6   : >> { %2500 = vrcp.f32 %v1212_v40 }
 0x4a7   : >> { %2502 = vrcp.f32 %v1221_v61 }
 0x4a8   : >> { %v2495_v36 = vpop.eup %2494 }
 0x4a9   : >> { %v1215_v39 = vpop.xlane.xlu0 %1214  ;;  %v1321_v49 = vpop.permute.xlu1 %1320  ;;  %v1287_v32 = vmul.f32 %v2495_v36, %v3198_v25 }
 0x4aa   : >> { %2504 = vrcp.f32 %v1215_v39  ;;  %2343 = vmatprep.subr.msk.bf16.mxu0 %vm1359_vm3, %v1321_v49  ;;  %v1361_v38 = vsel %vm1359_vm3, %v1321_v49, 0  ;;  %v2497_v35 = vpop.eup %2496 }
 0x4ab   : >> { %2506 = vrcp.f32 %v1218_v55  ;;  %2280 = vmatpush3.bf16.msra.mxu0 %v1361_v38  ;;  %v1308_v40 = vpack.c.bf16 %v1287_v32, %v1286_v46  ;;  %v2499_v58 = vpop.eup %2498  ;;  %v1289_v25 = vmul.f32 %v2497_v35, %v3193_v50 }
 0x4ac   : >> { %v1288_v53 = vmul.f32 %v2499_v58, %v3183_v63 }
 0x4ad   : >> { %v1230_v41 = vpop.xlane.xlu0 %1229 }
 0x4ae   : >> { %2282 = vmatmul.mubr.msk.bf16.vlgmr.msra.gmra.mrb[0].mxu0 %vm1041_vm2, %v1307_v27  ;;  %v1309_v55 = vpack.c.bf16 %v1289_v25, %v1288_v53 }
 0x4af   : >> { %2285 = vmatprep.mubr.msk.bf16.mxu0 %vm1041_vm2, %v1308_v40 }
 0x4b0   : >> { %v2501_v60 = vpop.eup %2500 }
 0x4b1   : >> { %v1224_v43 = vpop.xlane.xlu0 %1223  ;;  %v2503_v37 = vpop.eup %2502  ;;  %v1290_v24 = vmul.f32 %v2501_v60, %v3213_v62 }
 0x4b2   : >> { %v1293_v39 = vmul.f32 %v2503_v37, %v3202_v59 }
 0x4b4   : >> { %v2505_v54 = vpop.eup %2504 }
 0x4b5   : >> { %v2507_v61 = vpop.eup %2506  ;;  %v1233_v21 = vpop.xlane.xlu0 %1232  ;;  %v1291_v36 = vmul.f32 %v2505_v54, %v3218_v29 }
 0x4b6   : >> { %2286 = vmatmul.mubr.msk.bf16.gmra.mrb[4].mxu0 %vm1041_vm2, %v1309_v55  ;;  %2508 = vrcp.f32 %v1233_v21  ;;  %v1292_v50 = vmul.f32 %v2507_v61, %v3205_v48 }
 0x4b7   : >> { %v1310_v30 = vpack.c.bf16 %v1291_v36, %v1290_v24  ;;  %2510 = vrcp.f32 %v1224_v43 }
 0x4b8   : >> { %2512 = vrcp.f32 %v1230_v41  ;;  %v1311_v49 = vpack.c.bf16 %v1293_v39, %v1292_v50 }
 0x4b9   : >> { %v1227_v63 = vpop.xlane.xlu0 %1226  ;;  %2289 = vmatprep.mubr.msk.bf16.mxu0 %vm1041_vm2, %v1310_v30 }
 0x4ba   : >> { %2514 = vrcp.f32 %v1227_v63 }
 0x4bd   : >> { %v1236_v32 = vpop.xlane.xlu0 %1235 }
 0x4be   : >> { %2290 = vmatmul.mubr.msk.bf16.gmra.mrb[8].mxu0 %vm1041_vm2, %v1311_v49  ;;  %2516 = vrcp.f32 %v1236_v32 }
 0x4c0   : >> { %v2509_v62 = vpop.eup %2508 }
 0x4c1   : >> { %v1242_v29 = vpop.xlane.xlu0 %1241  ;;  %v2511_v38 = vpop.eup %2510  ;;  %v1297_v27 = vmul.f32 %v2509_v62, %v3233_v56 }
 0x4c2   : >> { %v2513_v26 = vpop.eup %2512  ;;  %v1294_v48 = vmul.f32 %v2511_v38, %v3228_v42  ;;  %2518 = vrcp.f32 %v1242_v29 }
 0x4c3   : >> { %v1296_v41 = vmul.f32 %v2513_v26, %v3223_v47 }
 0x4c4   : >> { %v2515_v46 = vpop.eup %2514 }
 0x4c5   : >> { %v1245_v35 = vpop.xlane.xlu0 %1244  ;;  %v1295_v59 = vmul.f32 %v2515_v46, %v3238_v51  ;;  %v1313_v58 = vpack.c.bf16 %v1297_v27, %v1296_v41 }
 0x4c6   : >> { %2520 = vrcp.f32 %v1245_v35 }
 0x4c7   : >> { %v1312_v40 = vpack.c.bf16 %v1295_v59, %v1294_v48 }
 0x4c8   : >> { %v2517_v51 = vpop.eup %2516 }
 0x4c9   : >> { %2293 = vmatprep.mubr.msk.bf16.mxu0 %vm1041_vm2, %v1312_v40  ;;  %v1254_v25 = vpop.xlane.xlu0 %1253  ;;  %v1298_v21 = vmul.f32 %v2517_v51, %v3245_v34 }
 0x4ca   : >> { %2294 = vmatmul.mubr.msk.bf16.gmra.mrb[12].mxu0 %vm1041_vm2, %v1313_v58 }
 0x4cc   : >> { %v2519_v47 = vpop.eup %2518 }
 0x4cd   : >> { %v1248_v43 = vpop.xlane.xlu0 %1247  ;;  %v1300_v30 = vmul.f32 %v2519_v47, %v3250_v52  ;;  %v2428_v52 = vld [vmem:[%s1540_s29] sm:$0xff]  }
 0x4ce   : >> { %2305 = vmatprep.subr.bf16.mxu0 %v2428_v52 }
 0x4cf   : >> { %2306 = vmatpush3.bf16.msra.mxu0 %v2428_v52 }
 0x4d0   : >> { %v2521_v53 = vpop.eup %2520 }
 0x4d1   : >> { %v1251_v60 = vpop.xlane.xlu0 %1250  ;;  %v1301_v61 = vmul.f32 %v2521_v53, %v3255_v33 }
 0x4d2   : >> { %2522 = vrcp.f32 %v1251_v60 }
 0x4d3   : >> { %2524 = vrcp.f32 %v1248_v43  ;;  %v1315_v63 = vpack.c.bf16 %v1301_v61, %v1300_v30 }
 0x4d5   : >> { %v1257_v42 = vpop.xlane.xlu0 %1256 }
 0x4da   : >> { %v1239_v56 = vpop.xlane.xlu1 %1238 }
 0x4db   : >> { %2526 = vrcp.f32 %v1239_v56 }
 0x4dc   : >> { %2528 = vrcp.f32 %v1257_v42  ;;  %v2523_v37 = vpop.eup %2522 }
 0x4dd   : >> { %2530 = vrcp.f32 %v1254_v25  ;;  %v2525_v54 = vpop.eup %2524  ;;  %v1303_v36 = vmul.f32 %v2523_v37, %v3268_v44 }
 0x4de   : >> { %v1302_v39 = vmul.f32 %v2525_v54, %v3264_v45  ;;  %v2429_v45 = vld [vmem:[%s1540_s29 + $0x8] sm:$0xff]   ;;  %s1782_s29 = scalar_lea.vmem %s3492_s16, %s2640_s26 }
 0x4df   : >> { %2307 = vmatprep.subr.bf16.mxu0 %v2429_v45 }
 0x4e0   : >> { %v1316_v32 = vpack.c.bf16 %v1303_v36, %v1302_v39  ;;  %2308 = vmatpush3.bf16.msra.mxu0 %v2429_v45 }
 0x4e5   : >> { %v2527_v55 = vpop.eup %2526 }
 0x4e6   : >> { %v1299_v24 = vmul.f32 %v2527_v55, %v3276_v31  ;;  %v2529_v49 = vpop.eup %2528 }
 0x4e7   : >> { %v2531_v33 = vpop.eup %2530  ;;  %v1305_v34 = vmul.f32 %v2529_v49, %v3272_v57 }
 0x4e8   : >> { %v1314_v50 = vpack.c.bf16 %v1299_v24, %v1298_v21  ;;  %v1304_v31 = vmul.f32 %v2531_v33, %v3260_v28 }
 0x4ea   : >> { %2297 = vmatprep.mubr.msk.bf16.mxu0 %vm1041_vm2, %v1314_v50  ;;  %v1317_v44 = vpack.c.bf16 %v1305_v34, %v1304_v31 }
 0x4eb   : >> { %2298 = vmatmul.mubr.msk.bf16.gmra.mrb[16].mxu0 %vm1041_vm2, %v1315_v63 }
 0x4ec   : >> { %2301 = vmatprep.mubr.msk.bf16.mxu0 %vm1041_vm2, %v1316_v32 }
 0x4f3   : >> { %2302 = vmatmul.mubr.msk.bf16.gmra.mrb[20].mxu0 %vm1041_vm2, %v1317_v44 }
 0x581   : >> { %v2283_v62 = vpop.f32.mrb[0].mxu0 }
 0x582   : >> { %v1397_v29 = vpop.f32.mrb[1].mxu0  ;;  %v1494_v60 = vmul.f32 %v2283_v62, %v2809_v2 }
 0x583   : >> { %v1492_v38 = vmul.f32 %v1397_v29, %v2799_v0  ;;  %v2284_v57 = vpop.f32.mrb[2].mxu0 }
 0x584   : >> { %v1495_v28 = vmul.f32 %v2284_v57, %v2815_v3  ;;  %v1400_v26 = vpop.f32.mrb[3].mxu0 }
 0x585   : >> { %v1493_v59 = vmul.f32 %v1400_v26, %v2804_v1 }
 0x586   : >> { %v1516_v46 = vadd.f32 %v1495_v28, %v1492_v38 }
 0x589   : >> { %v2287_v27 = vpop.f32.mrb[4].mxu0 }
 0x58a   : >> { %v1498_v35 = vmul.f32 %v2287_v27, %v2830_v6  ;;  %v1413_v48 = vpop.f32.mrb[5].mxu0 }
 0x58b   : >> { %v1496_v41 = vmul.f32 %v1413_v48, %v2820_v4  ;;  %v2288_v40 = vpop.f32.mrb[6].mxu0 }
 0x58c   : >> { %v1519_v58 = vadd.f32 %v1516_v46, %v1498_v35  ;;  %v1499_v25 = vmul.f32 %v2288_v40, %v2835_v7  ;;  %v1416_v43 = vpop.f32.mrb[7].mxu0 }
 0x58d   : >> { %v1517_v56 = vadd.f32 %v1496_v41, %v1493_v59  ;;  %v1497_v42 = vmul.f32 %v1416_v43, %v2825_v5 }
 0x58f   : >> { %v1520_v51 = vadd.f32 %v1517_v56, %v1499_v25  ;;  %v1518_v47 = vadd.f32 %v1497_v42, %v1494_v60 }
 0x591   : >> { %v2291_v53 = vpop.f32.mrb[8].mxu0 }
 0x592   : >> { %v1502_v37 = vmul.f32 %v2291_v53, %v2851_v10  ;;  %v1429_v54 = vpop.f32.mrb[9].mxu0 }
 0x593   : >> { %v1500_v55 = vmul.f32 %v1429_v54, %v2840_v8  ;;  %v2292_v61 = vpop.f32.mrb[10].mxu0 }
 0x594   : >> { %v1523_v21 = vadd.f32 %v1520_v51, %v1502_v37  ;;  %v1503_v24 = vmul.f32 %v2292_v61, %v2856_v11  ;;  %v1432_v36 = vpop.f32.mrb[11].mxu0  ;;  %v3545_v61 = vld [vmem:[#allocation13_spill] sm:$0xff] }
 0x595   : >> { %v1521_v30 = vadd.f32 %v1518_v47, %v1500_v55  ;;  %v1501_v50 = vmul.f32 %v1432_v36, %v2846_v9 }
 0x597   : >> { %v1524_v39 = vadd.f32 %v1521_v30, %v1503_v24  ;;  %v1522_v63 = vadd.f32 %v1519_v58, %v1501_v50 }
 0x59d   : >> { %v2295_v49 = vpop.f32.mrb[12].mxu0 }
 0x59e   : >> { %v1506_v32 = vmul.f32 %v2295_v49, %v2871_v14  ;;  %v1445_v33 = vpop.f32.mrb[13].mxu0 }
 0x59f   : >> { %v1504_v34 = vmul.f32 %v1445_v33, %v2861_v12  ;;  %v2296_v31 = vpop.f32.mrb[14].mxu0 }
 0x5a0   : >> { %v1527_v44 = vadd.f32 %v1524_v39, %v1506_v32  ;;  %v1507_v52 = vmul.f32 %v2296_v31, %v2876_v15  ;;  %v1448_v45 = vpop.f32.mrb[15].mxu0  ;;  %v2140_v39 = vld [vmem:[%s1545_s3] ss:$0 sm:$0xff]  ;;  %s1871_s3 = scalar_lea.vmem %s3487_s11, %s2640_s26 }
 0x5a1   : >> { %v1525_v62 = vadd.f32 %v1522_v63, %v1504_v34  ;;  %v1505_v29 = vmul.f32 %v1448_v45, %v2866_v13 }
 0x5a3   : >> { %v1528_v38 = vadd.f32 %v1525_v62, %v1507_v52  ;;  %v1526_v57 = vadd.f32 %v1523_v21, %v1505_v29  ;;  %v3547_v29 = vld [vmem:[#allocation16_spill] sm:$0xff] }
 0x5be   : >> { %v2299_v28 = vpop.f32.mrb[16].mxu0 }
 0x5bf   : >> { %v1510_v26 = vmul.f32 %v2299_v28, %v2891_v18  ;;  %v1461_v46 = vpop.f32.mrb[17].mxu0  ;;  %v3548_v28 = vld [vmem:[#allocation15_spill] sm:$0xff] }
 0x5c0   : >> { %v1508_v27 = vmul.f32 %v1461_v46, %v2881_v16  ;;  %v2300_v35 = vpop.f32.mrb[18].mxu0 }
 0x5c1   : >> { %v1531_v48 = vadd.f32 %v1528_v38, %v1510_v26  ;;  %v1511_v59 = vmul.f32 %v2300_v35, %v2896_v19  ;;  %v1464_v41 = vpop.f32.mrb[19].mxu0 }
 0x5c2   : >> { %v1529_v40 = vadd.f32 %v1526_v57, %v1508_v27  ;;  %v1509_v58 = vmul.f32 %v1464_v41, %v2886_v17  ;;  %v2430_v27 = vld [vmem:[%s1687_s24] sm:$0xff]  }
 0x5c3   : >> { %2313 = vmatprep.subr.bf16.mxu1 %v2430_v27 }
 0x5c4   : >> { %v1532_v25 = vadd.f32 %v1529_v40, %v1511_v59  ;;  %v1530_v43 = vadd.f32 %v1527_v44, %v1509_v58  ;;  %v3546_v44 = vld [vmem:[#allocation17_spill] sm:$0xff]  ;;  %2314 = vmatpush3.bf16.msra.mxu1 %v2430_v27 }
 0x5c6   : >> { %v2303_v60 = vpop.f32.mrb[20].mxu0 }
 0x5c7   : >> { %v1514_v56 = vmul.f32 %v2303_v60, %v2911_v22  ;;  %v1477_v42 = vpop.f32.mrb[21].mxu0 }
 0x5c8   : >> { %v1512_v51 = vmul.f32 %v1477_v42, %v2901_v20  ;;  %v2304_v47 = vpop.f32.mrb[22].mxu0 }
 0x5c9   : >> { %v1535_v53 = vadd.f32 %v1532_v25, %v1514_v56  ;;  %v1515_v37 = vmul.f32 %v2304_v47, %v2916_v23  ;;  %v1480_v54 = vpop.f32.mrb[23].mxu0 }
 0x5ca   : >> { %v1533_v55 = vadd.f32 %v1530_v43, %v1512_v51  ;;  %v1513_v21 = vmul.f32 %v1480_v54, %v3545_v61  ;;  %v2431_v54 = vld [vmem:[%s1687_s24 + $0x8] sm:$0xff]   ;;  %s1873_s24 = scalar_lea.vmem %s3488_s12, %s2640_s26  ;;  %s732_s26 = sadd.s32 1, %s2640_s26  }
 0x5cb   : >> { %2315 = vmatprep.subr.bf16.mxu1 %v2431_v54  ;;  %v2433_v61 = vld [vmem:[%s3367_s1 + $0x8] sm:$0xff]   ;;  %p729_p11 = scmp.ge.s32.totalorder %s732_s26, 6  }
 0x5cc   : >> { %v1536_v24 = vadd.f32 %v1533_v55, %v1515_v37  ;;  %v1534_v36 = vadd.f32 %v1531_v48, %v1513_v21  ;;  %2316 = vmatpush3.bf16.msra.mxu1 %v2431_v54  ;;  %v2432_v55 = vld [vmem:[%s3367_s1] sm:$0xff]   ;;  %s3550_s2 = sld [smem:[#allocation8_spill]] (%p729_p11)  ;;  %vm2645_vm4 = vmmov (%p729_p11), 0   ;;  %vm1994_vm5 = vcmask (%p729_p11), 73728   ;;  %s3555_s26 = sand.u32 (%p729_p11), 1, %s2616_s30  }
 0x5cd   : >> { %2321 = vmatprep.subr.bf16.mxu0 %v2432_v55 }
 0x5ce   : >> { %v1538_v30 = vpack.c.bf16 %v1536_v24, %v1536_v24  ;;  %v1537_v50 = vpack.c.bf16 %v1535_v53, %v1534_v36 }
 0x5d0   : >> { %2309 = vmatprep.mubr.msk.bf16.mxu0 %vm765_vm1, %v1537_v50 }
 0x5d1   : >> { %2310 = vmatmul.mubr.msk.bf16.vlgmr.msra.gmra.mrb[24].mxu0 %vm765_vm1, %v1538_v30 }
 0x5d2   : >> { %2322 = vmatpush3.bf16.msra.mxu0 %v2432_v55  ;;  %s2167_s20 = sshll.u32 (%p729_p11), %s3550_s2, 4  ;;  %s1997_s2 = scalar_lea.sflag (%p729_p11), [#allocation3], %s3555_s26 }
 0x5d3   : >> { %2323 = vmatprep.subr.bf16.mxu0 %v2433_v61 }
 0x5d6   : >> { %2324 = vmatpush3.bf16.msra.mxu0 %v2433_v61  ;;  %v2155_v61 = vld [vmem:[%s1782_s29] ss:$0 sm:$0xff] }
 0x6a4   : >> { %v2311_v63 = vpop.f32.mrb[24].mxu0 }
 0x6a5   : >> { %v1605_v49 = vpop.f32.mrb[25].mxu0  ;;  %v1614_v45 = vadd.f32 %v2311_v63, %v2140_v39 }
 0x6a6   : >> { %v1606_v32 = vadd.f32 %v2140_v39, %v1605_v49  ;;  %v2312_v33 = vpop.f32.mrb[26].mxu0 }
 0x6a7   : >> { %v1608_v34 = vpop.f32.mrb[27].mxu0  ;;  %v1621_v26 = vadd.f32 %v3548_v28, %v1614_v45 }
 0x6a8   : >> { %v1609_v31 = vadd.f32 %v2140_v39, %v1608_v34  ;;  %v1619_v52 = vadd.f32 %v3546_v44, %v1606_v32 }
 0x6a9   : >> { %v1632_v46 = vsel %vm765_vm1, %v1621_v26, 0.0 }
 0x6aa   : >> { %v1626_v62 = vsel %vm765_vm1, %v1619_v52, 0.0  ;;  %v1620_v38 = vadd.f32 %v3547_v29, %v1609_v31  ;;  %v2145_v31 = vld [vmem:[%s1622_s18] ss:$0 sm:$0xff]  ;;  %s3551_s18 = sld [smem:[#allocation23_spill]] (%p729_p11) }
 0x6ab   : >> { %1627 = vadd.xlane.f32.xlu0 %v1626_v62  ;;  %v2146_v62 = vld [vmem:[%s1624_s27] ss:$0 sm:$0xff]  ;;  %s2009_s27 = sshll.u32 (%p729_p11), %s2951_s21, 4  ;;  %s3433_s27 = int_to_ptr.vmem [resolvable:$true] %s2009_s27 }
 0x6ac   : >> { %v1629_v57 = vsel %vm765_vm1, %v1620_v38, 0.0  ;;  %s2546_s19 = scalar_lea.vmem (%p729_p11), %s3433_s27, 16 }
 0x6ad   : > { %p2547_p12 = scmp.ne.s32.totalorder (%p729_p11), %s3433_s27, %s2546_s19 }
 0x6af   : >> { %1630 = vadd.xlane.f32.xlu0 %v1629_v57  ;;  %p2548_p13 = pnand (%p729_p11), %p2547_p12, %p2785_p5 }
 0x6b0   : > { %v1937_v0 = vld [vmem:[%s3551_s18] sm:$0x1] (%p729_p11)  ;;  %s2646_s18 = smov (%p729_p11), [#allocation2]  }
 0x6b1   : > { %p2549_p0 = pneg (%p729_p11), %p2548_p13  ;;  %s2550_s4 = sshll.u32 (%p729_p11), %s2646_s18, 4  ;;  %s2551_s4 = int_to_ptr.vmem [resolvable:$false] %s2550_s4 }
 0x6b2   : > { %p2553_p1 = scmp.lt.s32.totalorder (%p729_p11), %s3433_s27, %s2551_s4 }
 0x6b3   : >> { %1633 = vadd.xlane.f32.xlu0 %v1632_v46 }
 0x738   : >> { %v1628_v35 = vpop.xlane.xlu0 %1627 }
 0x739   : >> { %v1636_v48 = vmul.f32 0.03125, %v1628_v35 }
 0x73b   : >> { %v1639_v59 = vsub.f32 %v1619_v52, %v1636_v48 }
 0x73c   : >> { %v1631_v41 = vpop.xlane.xlu0 %1630 }
 0x73d   : >> { %v1637_v40 = vmul.f32 0.03125, %v1631_v41  ;;  %v1642_v58 = vmul.f32 %v1639_v59, %v1639_v59  ;;  %v2435_v41 = vld [vmem:[%s3367_s1 + $0x18] sm:$0xff]  }
 0x73f   : >> { %v1640_v25 = vsub.f32 %v1620_v38, %v1637_v40  ;;  %v1645_v43 = vsel %vm765_vm1, %v1642_v58, 0.0  ;;  %v2148_v40 = vld [vmem:[%s1692_s0] ss:$0 sm:$0xff]  ;;  %s3553_s0 = sld [smem:[#allocation24_spill]] (%p729_p11) }
 0x740   : >> { %1646 = vadd.xlane.f32.xlu1 %v1645_v43  ;;  %v1634_v60 = vpop.xlane.xlu0 %1633 }
 0x741   : >> { %v1638_v56 = vmul.f32 0.03125, %v1634_v60  ;;  %v1643_v42 = vmul.f32 %v1640_v25, %v1640_v25 }
 0x743   : >> { %v1641_v51 = vsub.f32 %v1621_v26, %v1638_v56  ;;  %v1648_v47 = vsel %vm765_vm1, %v1643_v42, 0.0 }
 0x744   : >> { %1649 = vadd.xlane.f32.xlu0 %v1648_v47 }
 0x745   : >> { %v1644_v53 = vmul.f32 %v1641_v51, %v1641_v51  ;;  %s3431_s29 = scalar_lea.hbm (%p729_p11), %s3553_s0, %s2167_s20  ;;  %s2552_s20 = scalar_lea.vmem (%p729_p11), %s2551_s4, 32 }
 0x746   : > { %p2554_p2 = scmp.lt.s32.totalorder (%p729_p11), %s2552_s20, %s2546_s19 }
 0x747   : >> { %v1651_v37 = vsel %vm765_vm1, %v1644_v53, 0.0 }
 0x748   : >> { %1652 = vadd.xlane.f32.xlu1 %v1651_v37  ;;  %p2555_p3 = por (%p729_p11), %p2554_p2, %p2553_p1 }
 0x74a   : > { %p2556_p4 = pnand (%p729_p11), %p2555_p3, %p2549_p0 }
 0x7cd   : >> { %v1647_v21 = vpop.xlane.xlu1 %1646 }
 0x7ce   : >> { %v1654_v24 = vmul.f32 0.03125, %v1647_v21 }
 0x7d0   : >> { %v1657_v36 = vadd.f32 1e-05, %v1654_v24 }
 0x7d1   : >> { %v1650_v30 = vpop.xlane.xlu0 %1649 }
 0x7d2   : >> { %2532 = vrsqrt.f32 %v1657_v36  ;;  %v1655_v50 = vmul.f32 0.03125, %v1650_v30 }
 0x7d4   : >> { %v1658_v39 = vadd.f32 1e-05, %v1655_v50 }
 0x7d5   : >> { %v1653_v63 = vpop.xlane.xlu1 %1652 }
 0x7d6   : >> { %2534 = vrsqrt.f32 %v1658_v39  ;;  %v1656_v49 = vmul.f32 0.03125, %v1653_v63 }
 0x7d8   : >> { %v1659_v32 = vadd.f32 1e-05, %v1656_v49 }
 0x7da   : >> { %2536 = vrsqrt.f32 %v1659_v32 }
 0x7dc   : >> { %v2533_v33 = vpop.eup %2532 }
 0x7dd   : >> { %v1663_v34 = vmul.f32 %v2533_v33, %v1639_v59  ;;  %v2434_v59 = vld [vmem:[%s3367_s1 + $0x10] sm:$0xff]   ;;  %s3554_s1 = smov (%p729_p11), %s3553_s0 }
 0x7de   : >> { %2325 = vmatprep.subr.bf16.mxu0 %v2434_v59 }
 0x7df   : >> { %v1672_v45 = vmul.f32 %v2145_v31, %v1663_v34  ;;  %2326 = vmatpush3.bf16.msra.mxu0 %v2434_v59 }
 0x7e0   : >> { %v2535_v44 = vpop.eup %2534  ;;  %2327 = vmatprep.subr.bf16.mxu0 %v2435_v41 }
 0x7e1   : >> { %v1664_v52 = vmul.f32 %v2535_v44, %v1640_v25  ;;  %v1681_v28 = vadd.f32 %v2146_v62, %v1672_v45 }
 0x7e3   : >> { %v1673_v29 = vmul.f32 %v2145_v31, %v1664_v52  ;;  %2328 = vmatpush3.bf16.msra.mxu0 %v2435_v41 }
 0x7e4   : >> { %v2537_v38 = vpop.eup %2536 }
 0x7e5   : >> { %v1665_v57 = vmul.f32 %v2537_v38, %v1641_v51  ;;  %v1682_v26 = vadd.f32 %v2146_v62, %v1673_v29 }
 0x7e7   : >> { %v1674_v46 = vmul.f32 %v2145_v31, %v1665_v57  ;;  %v1684_v27 = vpack.c.bf16 %v1682_v26, %v1681_v28 }
 0x7e9   : >> { %v1683_v35 = vadd.f32 %v2146_v62, %v1674_v46  ;;  %2317 = vmatprep.mubr.msk.bf16.mxu1 %vm765_vm1, %v1684_v27 }
 0x7eb   : >> { %v1685_v48 = vpack.c.bf16 %v1683_v35, %v1683_v35 }
 0x7ed   : >> { %2318 = vmatmul.mubr.msk.bf16.vlgmr.msra.gmra.mrb[28].mxu1 %vm765_vm1, %v1685_v48 }
 0x8c0   : >> { %v2319_v58 = vpop.f32.mrb[28].mxu1 }
 0x8c1   : >> { %v1761_v25 = vadd.f32 %v2319_v58, %v2148_v40  ;;  %v1752_v43 = vpop.f32.mrb[29].mxu1 }
 0x8c2   : >> { %v1753_v60 = vadd.f32 %v2148_v40, %v1752_v43  ;;  %v2320_v56 = vpop.f32.mrb[30].mxu1 }
 0x8c3   : >> { %v1755_v42 = vpop.f32.mrb[31].mxu1  ;;  %v1768_v47 = vmax.f32 %v1761_v25, 0.0 }
 0x8c4   : >> { %v1756_v51 = vadd.f32 %v2148_v40, %v1755_v42  ;;  %v1766_v53 = vmax.f32 %v1753_v60, 0.0 }
 0x8c5   : >> { %v1770_v55 = vpack.c.bf16 %v1768_v47, %v1768_v47 }
 0x8c6   : >> { %v1767_v37 = vmax.f32 %v1756_v51, 0.0 }
 0x8c8   : >> { %v1769_v54 = vpack.c.bf16 %v1767_v37, %v1766_v53 }
 0x8ca   : >> { %2329 = vmatprep.mubr.msk.bf16.mxu0 %vm672_vm0, %v1769_v54  ;;  %v2162_v54 = vld [vmem:[%s1871_s3] ss:$0 sm:$0xff] }
 0x8cb   : >> { %2330 = vmatmul.mubr.msk.bf16.vlgmr.msra.gmra.mrb[28].mxu0 %vm672_vm0, %v1770_v55 }
 0x99e   : >> { %v2331_v21 = vpop.f32.mrb[28].mxu0 }
 0x99f   : >> { %v1854_v24 = vpop.f32.mrb[29].mxu0  ;;  %v1863_v36 = vadd.f32 %v2331_v21, %v2155_v61  ;;  %v2163_v21 = vld [vmem:[%s1873_s24] ss:$0 sm:$0xff] }
 0x9a0   : >> { %v1855_v30 = vadd.f32 %v2155_v61, %v1854_v24  ;;  %v2332_v50 = vpop.f32.mrb[30].mxu0 }
 0x9a1   : >> { %v1857_v39 = vpop.f32.mrb[31].mxu0  ;;  %v1870_v34 = vadd.f32 %v1863_v36, %v1683_v35 }
 0x9a2   : >> { %v1858_v63 = vadd.f32 %v2155_v61, %v1857_v39  ;;  %v1868_v49 = vadd.f32 %v1855_v30, %v1681_v28 }
 0x9a3   : >> { %v1881_v44 = vsel %vm765_vm1, %v1870_v34, 0.0 }
 0x9a4   : >> { %v1875_v32 = vsel %vm765_vm1, %v1868_v49, 0.0  ;;  %v1869_v33 = vadd.f32 %v1858_v63, %v1682_v26 }
 0x9a5   : >> { %1876 = vadd.xlane.f32.xlu0 %v1875_v32  ;;  %v2544_v32 = vld [vmem:[%s3493_s17] sm:$0xff] (%p729_p11)  }
 0x9a6   : >> { %v1878_v31 = vsel %vm765_vm1, %v1869_v33, 0.0 }
 0x9a7   : >> { %1879 = vadd.xlane.f32.xlu1 %v1878_v31  ;;  %v2545_v31 = vld [vmem:[%s3493_s17 + $0x8] sm:$0xff] (%p729_p11)  }
 0x9a9   : >> { %1882 = vadd.xlane.f32.xlu0 %v1881_v44 }
 0xa32   : >> { %v1877_v52 = vpop.xlane.xlu0 %1876 }
 0xa33   : >> { %v1884_v45 = vmul.f32 0.03125, %v1877_v52 }
 0xa34   : >> { %v1880_v62 = vpop.xlane.xlu1 %1879 }
 0xa35   : >> { %v1887_v29 = vsub.f32 %v1868_v49, %v1884_v45  ;;  %v1885_v38 = vmul.f32 0.03125, %v1880_v62 }
 0xa36   : >> { %v1883_v57 = vpop.xlane.xlu0 %1882 }
 0xa37   : >> { %v1888_v46 = vsub.f32 %v1869_v33, %v1885_v38  ;;  %v1886_v27 = vmul.f32 0.03125, %v1883_v57  ;;  %v1890_v28 = vmul.f32 %v1887_v29, %v1887_v29  ;;  %v2644_v33 = vmov (%p729_p11), 0.0  }
 0xa38   : > { %2333 = vmatprep.subr.bf16.mxu0 (%p729_p11), %v2644_v33  ;;  %2337 = vmatprep.mubr.msk.bf16.mxu0 (%p729_p11), %vm2645_vm4, %v2644_v33 }
 0xa39   : >> { %v1889_v48 = vsub.f32 %v1870_v34, %v1886_v27  ;;  %v1893_v26 = vsel %vm765_vm1, %v1890_v28, 0.0  ;;  %v1891_v35 = vmul.f32 %v1888_v46, %v1888_v46  ;;  %2334 = vmatpush3.bf16.msra.mxu0 (%p729_p11), %v2544_v32 }
 0xa3a   : >> { %1894 = vadd.xlane.f32.xlu1 %v1893_v26  ;;  %2335 = vmatprep.subr.bf16.mxu0 (%p729_p11), %v2644_v33 }
 0xa3b   : >> { %v1896_v59 = vsel %vm765_vm1, %v1891_v35, 0.0  ;;  %v1892_v41 = vmul.f32 %v1889_v48, %v1889_v48 }
 0xa3c   : >> { %1897 = vadd.xlane.f32.xlu0 %v1896_v59 }
 0xa3d   : >> { %v1899_v40 = vsel %vm765_vm1, %v1892_v41, 0.0  ;;  %2336 = vmatpush3.bf16.msra.mxu0 (%p729_p11), %v2545_v31 }
 0xa3e   : >> { %1900 = vadd.xlane.f32.xlu1 %v1899_v40 }
 0xac7   : >> { %v1895_v58 = vpop.xlane.xlu1 %1894 }
 0xac8   : >> { %v1902_v25 = vmul.f32 0.03125, %v1895_v58 }
 0xac9   : >> { %v1898_v43 = vpop.xlane.xlu0 %1897 }
 0xaca   : >> { %v1905_v60 = vadd.f32 1e-05, %v1902_v25  ;;  %v1903_v56 = vmul.f32 0.03125, %v1898_v43 }
 0xacb   : >> { %v1901_v42 = vpop.xlane.xlu1 %1900 }
 0xacc   : >> { %2538 = vrsqrt.f32 %v1905_v60  ;;  %v1906_v51 = vadd.f32 1e-05, %v1903_v56  ;;  %v1904_v47 = vmul.f32 0.03125, %v1901_v42 }
 0xace   : >> { %2540 = vrsqrt.f32 %v1906_v51  ;;  %v1907_v53 = vadd.f32 1e-05, %v1904_v47 }
 0xad0   : >> { %2542 = vrsqrt.f32 %v1907_v53 }
 0xad6   : >> { %v2539_v37 = vpop.eup %2538 }
 0xad7   : >> { %v1911_v55 = vmul.f32 %v2539_v37, %v1887_v29 }
 0xad8   : >> { %v2541_v61 = vpop.eup %2540 }
 0xad9   : >> { %v1920_v24 = vmul.f32 %v2162_v54, %v1911_v55  ;;  %v1912_v36 = vmul.f32 %v2541_v61, %v1888_v46  ;;  %731 = sbr.rel (!%p729_p11) target bundleno = 281 (0x119), region = 150 }
 0xada   : >> { %v2543_v30 = vpop.eup %2542 }
 0xadb   : >> { %v1929_v50 = vadd.f32 %v2163_v21, %v1920_v24   ;;  %v1921_v39 = vmul.f32 %v2162_v54, %v1912_v36  ;;  %v1913_v63 = vmul.f32 %v2543_v30, %v1889_v48 }
 0xadd   : >> { %v1930_v40 = vadd.f32 %v2163_v21, %v1921_v39   ;;  %v1922_v49 = vmul.f32 %v2162_v54, %v1913_v63  ;;  %v3549_v37 = vmov %v1929_v50  ;;  %v1932_v44 = vpack.c.bf16 (%p729_p11), %v1929_v50, %v1929_v50 }
 0xadf   : >> { %v1931_v34 = vadd.f32 %v2163_v21, %v1922_v49   ;;  %2338 = vmatmul.mubr.msk.bf16.vlgmr.msra.gmra.mrb[0].mxu0 (%p729_p11), %vm765_vm1, %v1932_v44 }
 0xbb2   : > { %v1988_v1 = vpop.f32.mrb[0].mxu0 }
 0xbb3   : > { %v1989_v2 = vadd.f32 %v1988_v1, %v1937_v0  ;;  %v2339_v3 = vpop.f32.mrb[1].mxu0 }
 0xbb4   : > { %v1991_v4 = vpop.f32.mrb[2].mxu0 }
 0xbb5   : > { %1995 = vst.msk [vmem:[%s2951_s21] sm:$0x1] %vm1994_vm5, %v1989_v2  ;;  %v2340_v5 = vpop.f32.mrb[3].mxu0 }
 0xbb6   : > { %2559 = shalt.err (!%p2556_p4)
}
 0xbb7   : > { %s2560_s21 = scalar_lea.hbm %s3431_s29, 16  ;;  %s2564_s0 = scalar_lea.hbm %s3554_s1, 32 }
 0xbb8   : > { %p2561_p7 = scmp.ne.s32.totalorder %s3431_s29, %s2560_s21  ;;  %p2565_p10 = scmp.lt.u32.totalorder %s3431_s29, %s3554_s1 }
 0xbb9   : > { %p2566_p11 = scmp.lt.u32.totalorder %s2564_s0, %s2560_s21  ;;  %p2568_p13 = scmp.lt.u32.totalorder %s2560_s21, %s3431_s29 }
 0xbba   : > { %p2562_p8 = pnand %p2561_p7, %p2785_p5 }
 0xbbb   : > { %p2567_p12 = por %p2566_p11, %p2565_p10 }
 0xbbc   : > { %p2563_p9 = pneg %p2562_p8 }
 0xbbd   : > { %p2569_p0 = por %p2568_p13, %p2567_p12 }
 0xbbf   : > { %p2570_p1 = pnand %p2569_p0, %p2563_p9 }
 0xbc1   : > { %2573 = shalt.err (!%p2570_p1)
}
 0xbc2   : > { %2345 = dma.vmem_to_hbm [thread:$0]  (%p2785_p5), %s3433_s27, 16, %s3431_s29, %s1997_s2  }
 0xbc3 PF: > { %s3556_s19 = sld [smem:[#allocation7_spill]]  ;;  %s3557_s18 = sld [smem:[#allocation5_spill]] }
 0xbc9   : > { %p2351_p2 = scmp.ge.s32.totalorder %s3556_s19, 2  ;;  %s2021_s24 = sand.u32 1, %s3557_s18  }
 0xbca   : > { %s2022_s28 = scalar_lea.sflag [#allocation3], %s2021_s24 }
 0xbcb   : > { %p2348_p3 = pnand %p2351_p2, %p2789_p6 }
 0xbcd   : > { %2607 = dma.done.wait (!%p2348_p3), %s2022_s28, 16  }
 0xbce   : > { %2609 = vsyncadd (!%p2348_p3), %s2022_s28, 4294967280  ;;  %s3559_s21 = sld [smem:[#allocation9_spill]]  ;;  %s3560_s26 = sld [smem:[#allocation6_spill]] }
 0xbcf   : > { %s3561_s20 = sld [smem:[#allocation10_spill]]  ;;  %s3562_s0 = smov %s2616_s30 }
 0xbd4   : > { %p29_p4 = scmp.ge.s32.totalorder %s3559_s21, 4   ;;  %s3563_s30 = smov %s3560_s26 }
 0xbd6   :  { %31 = sbr.rel (!%p29_p4) target bundleno = 11 (0xb), region = 161 }
 0xbdd   :  { %2026 = vsyncpa [#allocation3], 1 }
 0xbde   :  { %2028 = vsyncpa [#allocation3 + $0x1], 1 }

</bundles_post_ra>
